<compile_context>
chip_gen: v7x
topology: tpu7x:2x2x1
jax: 0.10.0
libtpu: 0.0.40
codegen_flags: <defaults>
</compile_context>

<pallas_src>
import numpy as np
import jax
import jax.numpy as jnp
from jax.experimental import pallas as pl
from jax.experimental.pallas import tpu as pltpu


# ---------------------------------------------------------------------------
# One-time parameter preparation (layout plumbing done outside the kernel)
# ---------------------------------------------------------------------------
def _toeplitz(w, w_in):
    """w:(Cout,Cin,K,K) -> (K, w_in*Cin, Wo*Cout) H-shift Toeplitz matrices.

    t[di][(wo+dj)*Cin + ci, wo*Cout + co] = w[co, ci, di, dj], so that a valid
    cross-correlation on a channels-last (H, W*Cin) image X is
        out(H-K+1, Wo*Cout) = sum_di X[di:di+Ho, :] @ t[di].
    """
    w = np.asarray(w, np.float32)
    cout, cin, k, _ = w.shape
    wo_n = w_in - k + 1
    t = np.zeros((k, w_in * cin, wo_n * cout), np.float32)
    for di in range(k):
        for wo in range(wo_n):
            for dj in range(k):
                iw = wo + dj
                t[di, iw * cin:(iw + 1) * cin, wo * cout:(wo + 1) * cout] = w[:, :, di, dj].T
    return t


def _pool_mats(rows, w_cols, c):
    """0/1 selection matrices for a fused 2x2 max-pool on an (rows, w_cols*c)
    channels-minor activation: even/odd row selectors and even/odd col selectors."""
    ra = np.zeros((rows // 2, rows), np.float32)
    rb = np.zeros((rows // 2, rows), np.float32)
    for i in range(rows // 2):
        ra[i, 2 * i] = 1.0
        rb[i, 2 * i + 1] = 1.0
    ca = np.zeros((w_cols * c, (w_cols // 2) * c), np.float32)
    cb = np.zeros((w_cols * c, (w_cols // 2) * c), np.float32)
    for j in range(w_cols // 2):
        for ch in range(c):
            ca[(2 * j) * c + ch, j * c + ch] = 1.0
            cb[(2 * j + 1) * c + ch, j * c + ch] = 1.0
    return ra, rb, ca, cb


_PREP_ORDER = ["w1t", "b1r", "ra1", "rb1", "ca1", "cb1",
               "w2t", "b2r", "ra2", "rb2", "ca2", "cb2",
               "wf1", "bf1", "wf2", "bf2", "wf3", "bf3"]


def prepare_params(params):
    """Transform PyTorch-layout params into the layouts the fused kernel eats."""
    w1t = _toeplitz(params["conv1_w"], 32)                                   # (5, 96, 168)
    b1r = np.tile(np.asarray(params["conv1_b"], np.float32), 28)[None, :]    # (1, 168)
    ra1, rb1, ca1, cb1 = _pool_mats(28, 28, 6)                               # (14,28)x2,(168,84)x2
    w2t = _toeplitz(params["conv2_w"], 14)                                   # (5, 84, 160)
    b2r = np.tile(np.asarray(params["conv2_b"], np.float32), 10)[None, :]    # (1, 160)
    ra2, rb2, ca2, cb2 = _pool_mats(10, 10, 16)                              # (5,10)x2,(160,80)x2

    # fc1 weight (120, 400); PyTorch flatten order of (16,5,5) is (c, h, w).
    # Kernel's pooled2 rows are h, columns are w*16+c -> permute to (h, w*16+c, o).
    fc1 = np.asarray(params["fc1_w"], np.float32)
    wf1 = fc1.reshape(120, 16, 5, 5).transpose(2, 3, 1, 0).reshape(5, 80, 120)
    bf1 = np.asarray(params["fc1_b"], np.float32)[None, :]                   # (1, 120)
    wf2 = np.asarray(params["fc2_w"], np.float32).T                          # (120, 84)
    bf2 = np.asarray(params["fc2_b"], np.float32)[None, :]                   # (1, 84)
    wf3 = np.zeros((84, 128), np.float32)                                    # pad 2 -> 128 lanes
    wf3[:, :2] = np.asarray(params["fc3_w"], np.float32).T
    bf3 = np.zeros((1, 128), np.float32)
    bf3[0, :2] = np.asarray(params["fc3_b"], np.float32)

    vals = [w1t, b1r, ra1, rb1, ca1, cb1, w2t, b2r, ra2, rb2, ca2, cb2,
            wf1, bf1, wf2, bf2, wf3, bf3]
    return {n: jnp.asarray(v) for n, v in zip(_PREP_ORDER, vals)}


# ---------------------------------------------------------------------------
# The fused kernel: whole forward pass for one image per grid step
# ---------------------------------------------------------------------------
def _fused_forward_kernel(x_ref,
                          w1t_ref, b1_ref, ra1_ref, rb1_ref, ca1_ref, cb1_ref,
                          w2t_ref, b2_ref, ra2_ref, rb2_ref, ca2_ref, cb2_ref,
                          wf1_ref, bf1_ref, wf2_ref, bf2_ref, wf3_ref, bf3_ref,
                          o_ref, p1_ref, p2_ref):
    f32 = jnp.float32

    def mm(a, b):
        return jnp.dot(a, b, preferred_element_type=f32)

    # ---- conv1 + bias + ReLU: 5 H-shift Toeplitz matmuls on (32, 32*3) ----
    acc1 = jnp.zeros((28, 168), f32)
    for di in range(5):
        acc1 = acc1 + mm(x_ref[0, pl.ds(di, 28), :], w1t_ref[di])   # (28,96)@(96,168)
    y1 = jnp.maximum(acc1 + b1_ref[...], 0.0)                       # (28, 168)

    # ---- maxpool 2x2: even/odd selection matmuls + elementwise max -> (14,84)
    rmax1 = jnp.maximum(mm(ra1_ref[...], y1), mm(rb1_ref[...], y1))          # (14, 168)
    p1_ref[...] = jnp.maximum(mm(rmax1, ca1_ref[...]), mm(rmax1, cb1_ref[...]))  # (14, 84)

    # ---- conv2 + bias + ReLU -> (10, 10*16) ----
    acc2 = jnp.zeros((10, 160), f32)
    for di in range(5):
        acc2 = acc2 + mm(p1_ref[pl.ds(di, 10), :], w2t_ref[di])     # (10,84)@(84,160)
    y2 = jnp.maximum(acc2 + b2_ref[...], 0.0)                       # (10, 160)

    # ---- maxpool 2x2 -> (5, 80) ----
    rmax2 = jnp.maximum(mm(ra2_ref[...], y2), mm(rb2_ref[...], y2))          # (5, 160)
    p2_ref[...] = jnp.maximum(mm(rmax2, ca2_ref[...]), mm(rmax2, cb2_ref[...]))  # (5, 80)

    # ---- classifier (all in VMEM) ----
    z = bf1_ref[...]                                                # (1, 120)
    for h in range(5):                                              # fc1: 400 -> 120
        z = z + mm(p2_ref[pl.ds(h, 1), :], wf1_ref[h])              # (1,80)@(80,120)
    z = jnp.maximum(z, 0.0)
    z = jnp.maximum(mm(z, wf2_ref[...]) + bf2_ref[...], 0.0)        # fc2: 120 -> 84
    z = mm(z, wf3_ref[...]) + bf3_ref[...]                          # fc3: 84 -> 2 (padded 128)
    o_ref[0] = z                                                    # single lane-dense store


# ---------------------------------------------------------------------------
# Forward pass wrapper
# ---------------------------------------------------------------------------
def neuralnet_forward(prep, x):
    """x:(N, 3072) float32 -> logits (N, 2)."""
    n = x.shape[0]
    # PyTorch view(-1,3,32,32) is NCHW; go channels-last (H, W*C) once, up front.
    x0 = x.reshape(n, 3, 32, 32).transpose(0, 2, 3, 1).reshape(n, 32, 96)

    def const_spec(shape):
        nd = len(shape)
        return pl.BlockSpec(shape, lambda i: (0,) * nd)   # resident, same block every step

    weights = [prep[k] for k in _PREP_ORDER]

    out = pl.pallas_call(
        _fused_forward_kernel,
        out_shape=jax.ShapeDtypeStruct((n, 1, 128), jnp.float32),
        grid=(n,),
        in_specs=[pl.BlockSpec((1, 32, 96), lambda i: (i, 0, 0))]
                 + [const_spec(w.shape) for w in weights],
        out_specs=pl.BlockSpec((1, 1, 128), lambda i: (i, 0, 0)),
        scratch_shapes=[pltpu.VMEM((14, 84), jnp.float32),   # pooled conv1 activations
                        pltpu.VMEM((5, 80), jnp.float32)],   # pooled conv2 activations
        compiler_params=pltpu.CompilerParams(
            dimension_semantics=("parallel",)),              # batch split across TCs on v7x
    )(x0, *weights)
    return out[:, 0, :2]


# ---------------------------------------------------------------------------
# Parameters (deterministic synthetic init, same shapes as the nn.Module)
# ---------------------------------------------------------------------------
def init_params(key):
    ks = jax.random.split(key, 10)
    scale = 0.05
    return {
        "conv1_w": jax.random.normal(ks[0], (6, 3, 5, 5), jnp.float32) * scale,
        "conv1_b": jax.random.normal(ks[1], (6,), jnp.float32) * scale,
        "conv2_w": jax.random.normal(ks[2], (16, 6, 5, 5), jnp.float32) * scale,
        "conv2_b": jax.random.normal(ks[3], (16,), jnp.float32) * scale,
        "fc1_w": jax.random.normal(ks[4], (120, 400), jnp.float32) * scale,
        "fc1_b": jax.random.normal(ks[5], (120,), jnp.float32) * scale,
        "fc2_w": jax.random.normal(ks[6], (84, 120), jnp.float32) * scale,
        "fc2_b": jax.random.normal(ks[7], (84,), jnp.float32) * scale,
        "fc3_w": jax.random.normal(ks[8], (2, 84), jnp.float32) * scale,
        "fc3_b": jax.random.normal(ks[9], (2,), jnp.float32) * scale,
    }


# ---------------------------------------------------------------------------
# Pure-JAX reference (operates on the ORIGINAL PyTorch-layout params)
# ---------------------------------------------------------------------------
def neuralnet_forward_ref(params, x):
    n = x.shape[0]
    x = x.reshape(n, 3, 32, 32)

    def conv(x, w, b):
        y = jax.lax.conv_general_dilated(
            x, w, window_strides=(1, 1), padding="VALID",
            dimension_numbers=("NCHW", "OIHW", "NCHW"))
        return jnp.maximum(y + b[None, :, None, None], 0.0)

    def pool(x):
        N, C, H, W = x.shape
        return x.reshape(N, C, H // 2, 2, W // 2, 2).max(axis=(3, 5))

    x = pool(conv(x, params["conv1_w"], params["conv1_b"]))
    x = pool(conv(x, params["conv2_w"], params["conv2_b"]))
    x = x.reshape(n, 400)
    x = jnp.maximum(x @ params["fc1_w"].T + params["fc1_b"], 0.0)
    x = jnp.maximum(x @ params["fc2_w"].T + params["fc2_b"], 0.0)
    return x @ params["fc3_w"].T + params["fc3_b"]


if __name__ == "__main__":
    # TODO(synk): step()/training (CrossEntropyLoss + SGD) is not implemented; forward only.
    key = jax.random.PRNGKey(0)
    pkey, xkey = jax.random.split(key)
    params = init_params(pkey)
    prep = prepare_params(params)          # one-time weight layout prep (perf feedback)

    N = 2
    x = jax.random.normal(xkey, (N, 3 * 32 * 32), jnp.float32)   # (N, in_size)

    fwd = jax.jit(neuralnet_forward)
    y = jax.block_until_ready(fwd(prep, x))

    y_ref = neuralnet_forward_ref(params, x)
    assert y.shape == (N, 2)
    assert jnp.allclose(y, y_ref, rtol=1e-3, atol=1e-3), "mismatch vs reference"

    print("KERNEL_OK")
</pallas_src>

<mosaic_0001>
module attributes {stable_mosaic.version = 11 : i64} {
  func.func @_fused_forward_kernel(%arg0: i32, %arg1: memref<1x32x96xf32, #tpu.memory_space<vmem>>, %arg2: memref<5x96x168xf32, #tpu.memory_space<vmem>>, %arg3: memref<1x168xf32, #tpu.memory_space<vmem>>, %arg4: memref<14x28xf32, #tpu.memory_space<vmem>>, %arg5: memref<14x28xf32, #tpu.memory_space<vmem>>, %arg6: memref<168x84xf32, #tpu.memory_space<vmem>>, %arg7: memref<168x84xf32, #tpu.memory_space<vmem>>, %arg8: memref<5x84x160xf32, #tpu.memory_space<vmem>>, %arg9: memref<1x160xf32, #tpu.memory_space<vmem>>, %arg10: memref<5x10xf32, #tpu.memory_space<vmem>>, %arg11: memref<5x10xf32, #tpu.memory_space<vmem>>, %arg12: memref<160x80xf32, #tpu.memory_space<vmem>>, %arg13: memref<160x80xf32, #tpu.memory_space<vmem>>, %arg14: memref<5x80x120xf32, #tpu.memory_space<vmem>>, %arg15: memref<1x120xf32, #tpu.memory_space<vmem>>, %arg16: memref<120x84xf32, #tpu.memory_space<vmem>>, %arg17: memref<1x84xf32, #tpu.memory_space<vmem>>, %arg18: memref<84x128xf32, #tpu.memory_space<vmem>>, %arg19: memref<1x128xf32, #tpu.memory_space<vmem>>, %arg20: memref<1x1x128xf32, #tpu.memory_space<vmem>>, %arg21: memref<14x84xf32, #tpu.memory_space<vmem>>, %arg22: memref<5x80xf32, #tpu.memory_space<vmem>>) attributes {dimension_semantics = [#tpu.dimension_semantics<parallel>], iteration_bounds = array<i64: 2>, scalar_prefetch = 0 : i64, scratch_operands = 2 : i64, tpu.core_type = #tpu.core_type<tc>, window_params = [{transform_indices = @transform_0, window_bounds = array<i64: 1, 32, 96>}, {pipeline_mode = #tpu.pipeline_mode<synchronous>, transform_indices = @transform_1, window_bounds = array<i64: 5, 96, 168>}, {pipeline_mode = #tpu.pipeline_mode<synchronous>, transform_indices = @transform_2, window_bounds = array<i64: 1, 168>}, {pipeline_mode = #tpu.pipeline_mode<synchronous>, transform_indices = @transform_3, window_bounds = array<i64: 14, 28>}, {pipeline_mode = #tpu.pipeline_mode<synchronous>, transform_indices = @transform_4, window_bounds = array<i64: 14, 28>}, {pipeline_mode = #tpu.pipeline_mode<synchronous>, transform_indices = @transform_5, window_bounds = array<i64: 168, 84>}, {pipeline_mode = #tpu.pipeline_mode<synchronous>, transform_indices = @transform_6, window_bounds = array<i64: 168, 84>}, {pipeline_mode = #tpu.pipeline_mode<synchronous>, transform_indices = @transform_7, window_bounds = array<i64: 5, 84, 160>}, {pipeline_mode = #tpu.pipeline_mode<synchronous>, transform_indices = @transform_8, window_bounds = array<i64: 1, 160>}, {pipeline_mode = #tpu.pipeline_mode<synchronous>, transform_indices = @transform_9, window_bounds = array<i64: 5, 10>}, {pipeline_mode = #tpu.pipeline_mode<synchronous>, transform_indices = @transform_10, window_bounds = array<i64: 5, 10>}, {pipeline_mode = #tpu.pipeline_mode<synchronous>, transform_indices = @transform_11, window_bounds = array<i64: 160, 80>}, {pipeline_mode = #tpu.pipeline_mode<synchronous>, transform_indices = @transform_12, window_bounds = array<i64: 160, 80>}, {pipeline_mode = #tpu.pipeline_mode<synchronous>, transform_indices = @transform_13, window_bounds = array<i64: 5, 80, 120>}, {pipeline_mode = #tpu.pipeline_mode<synchronous>, transform_indices = @transform_14, window_bounds = array<i64: 1, 120>}, {pipeline_mode = #tpu.pipeline_mode<synchronous>, transform_indices = @transform_15, window_bounds = array<i64: 120, 84>}, {pipeline_mode = #tpu.pipeline_mode<synchronous>, transform_indices = @transform_16, window_bounds = array<i64: 1, 84>}, {pipeline_mode = #tpu.pipeline_mode<synchronous>, transform_indices = @transform_17, window_bounds = array<i64: 84, 128>}, {pipeline_mode = #tpu.pipeline_mode<synchronous>, transform_indices = @transform_18, window_bounds = array<i64: 1, 128>}, {transform_indices = @transform_19, window_bounds = array<i64: 1, 1, 128>}]} {
    %cst = arith.constant 0.000000e+00 : f32
    %0 = vector.broadcast %cst : f32 to vector<28x168xf32>
    %c0 = arith.constant 0 : index
    %c0_0 = arith.constant 0 : index
    %c0_1 = arith.constant 0 : index
    %1 = vector.load %arg1[%c0, %c0_0, %c0_1] : memref<1x32x96xf32, #tpu.memory_space<vmem>>, vector<1x28x96xf32>
    %2 = vector.shape_cast %1 : vector<1x28x96xf32> to vector<28x96xf32>
    %c0_2 = arith.constant 0 : index
    %c0_3 = arith.constant 0 : index
    %c0_4 = arith.constant 0 : index
    %3 = vector.load %arg2[%c0_2, %c0_3, %c0_4] : memref<5x96x168xf32, #tpu.memory_space<vmem>>, vector<1x96x168xf32>
    %4 = vector.shape_cast %3 : vector<1x96x168xf32> to vector<96x168xf32>
    %cst_5 = arith.constant dense<0.000000e+00> : vector<28x168xf32>
    %5 = tpu.matmul %2, %4, %cst_5 {dimension_numbers = #tpu.dot_dimension_numbers<[1], [0], [0], [1], [0, 0, 1, 1], [], []>} : vector<28x96xf32>, vector<96x168xf32>, vector<28x168xf32> -> vector<28x168xf32>
    %6 = arith.addf %0, %5 : vector<28x168xf32>
    %c0_6 = arith.constant 0 : index
    %c1 = arith.constant 1 : index
    %c0_7 = arith.constant 0 : index
    %7 = vector.load %arg1[%c0_6, %c1, %c0_7] : memref<1x32x96xf32, #tpu.memory_space<vmem>>, vector<1x28x96xf32>
    %8 = vector.shape_cast %7 : vector<1x28x96xf32> to vector<28x96xf32>
    %c1_8 = arith.constant 1 : index
    %c0_9 = arith.constant 0 : index
    %c0_10 = arith.constant 0 : index
    %9 = vector.load %arg2[%c1_8, %c0_9, %c0_10] : memref<5x96x168xf32, #tpu.memory_space<vmem>>, vector<1x96x168xf32>
    %10 = vector.shape_cast %9 : vector<1x96x168xf32> to vector<96x168xf32>
    %cst_11 = arith.constant dense<0.000000e+00> : vector<28x168xf32>
    %11 = tpu.matmul %8, %10, %cst_11 {dimension_numbers = #tpu.dot_dimension_numbers<[1], [0], [0], [1], [0, 0, 1, 1], [], []>} : vector<28x96xf32>, vector<96x168xf32>, vector<28x168xf32> -> vector<28x168xf32>
    %12 = arith.addf %6, %11 : vector<28x168xf32>
    %c0_12 = arith.constant 0 : index
    %c2 = arith.constant 2 : index
    %c0_13 = arith.constant 0 : index
    %13 = vector.load %arg1[%c0_12, %c2, %c0_13] : memref<1x32x96xf32, #tpu.memory_space<vmem>>, vector<1x28x96xf32>
    %14 = vector.shape_cast %13 : vector<1x28x96xf32> to vector<28x96xf32>
    %c2_14 = arith.constant 2 : index
    %c0_15 = arith.constant 0 : index
    %c0_16 = arith.constant 0 : index
    %15 = vector.load %arg2[%c2_14, %c0_15, %c0_16] : memref<5x96x168xf32, #tpu.memory_space<vmem>>, vector<1x96x168xf32>
    %16 = vector.shape_cast %15 : vector<1x96x168xf32> to vector<96x168xf32>
    %cst_17 = arith.constant dense<0.000000e+00> : vector<28x168xf32>
    %17 = tpu.matmul %14, %16, %cst_17 {dimension_numbers = #tpu.dot_dimension_numbers<[1], [0], [0], [1], [0, 0, 1, 1], [], []>} : vector<28x96xf32>, vector<96x168xf32>, vector<28x168xf32> -> vector<28x168xf32>
    %18 = arith.addf %12, %17 : vector<28x168xf32>
    %c0_18 = arith.constant 0 : index
    %c3 = arith.constant 3 : index
    %c0_19 = arith.constant 0 : index
    %19 = vector.load %arg1[%c0_18, %c3, %c0_19] : memref<1x32x96xf32, #tpu.memory_space<vmem>>, vector<1x28x96xf32>
    %20 = vector.shape_cast %19 : vector<1x28x96xf32> to vector<28x96xf32>
    %c3_20 = arith.constant 3 : index
    %c0_21 = arith.constant 0 : index
    %c0_22 = arith.constant 0 : index
    %21 = vector.load %arg2[%c3_20, %c0_21, %c0_22] : memref<5x96x168xf32, #tpu.memory_space<vmem>>, vector<1x96x168xf32>
    %22 = vector.shape_cast %21 : vector<1x96x168xf32> to vector<96x168xf32>
    %cst_23 = arith.constant dense<0.000000e+00> : vector<28x168xf32>
    %23 = tpu.matmul %20, %22, %cst_23 {dimension_numbers = #tpu.dot_dimension_numbers<[1], [0], [0], [1], [0, 0, 1, 1], [], []>} : vector<28x96xf32>, vector<96x168xf32>, vector<28x168xf32> -> vector<28x168xf32>
    %24 = arith.addf %18, %23 : vector<28x168xf32>
    %c0_24 = arith.constant 0 : index
    %c4 = arith.constant 4 : index
    %c0_25 = arith.constant 0 : index
    %25 = vector.load %arg1[%c0_24, %c4, %c0_25] : memref<1x32x96xf32, #tpu.memory_space<vmem>>, vector<1x28x96xf32>
    %26 = vector.shape_cast %25 : vector<1x28x96xf32> to vector<28x96xf32>
    %c4_26 = arith.constant 4 : index
    %c0_27 = arith.constant 0 : index
    %c0_28 = arith.constant 0 : index
    %27 = vector.load %arg2[%c4_26, %c0_27, %c0_28] : memref<5x96x168xf32, #tpu.memory_space<vmem>>, vector<1x96x168xf32>
    %28 = vector.shape_cast %27 : vector<1x96x168xf32> to vector<96x168xf32>
    %cst_29 = arith.constant dense<0.000000e+00> : vector<28x168xf32>
    %29 = tpu.matmul %26, %28, %cst_29 {dimension_numbers = #tpu.dot_dimension_numbers<[1], [0], [0], [1], [0, 0, 1, 1], [], []>} : vector<28x96xf32>, vector<96x168xf32>, vector<28x168xf32> -> vector<28x168xf32>
    %30 = arith.addf %24, %29 : vector<28x168xf32>
    %c0_30 = arith.constant 0 : index
    %c0_31 = arith.constant 0 : index
    %31 = vector.load %arg3[%c0_30, %c0_31] : memref<1x168xf32, #tpu.memory_space<vmem>>, vector<1x168xf32>
    %32 = vector.broadcast %31 : vector<1x168xf32> to vector<28x168xf32>
    %33 = arith.addf %30, %32 : vector<28x168xf32>
    %cst_32 = arith.constant 0.000000e+00 : f32
    %34 = vector.broadcast %cst_32 : f32 to vector<28x168xf32>
    %35 = arith.maximumf %33, %34 : vector<28x168xf32>
    %c0_33 = arith.constant 0 : index
    %c0_34 = arith.constant 0 : index
    %36 = vector.load %arg4[%c0_33, %c0_34] : memref<14x28xf32, #tpu.memory_space<vmem>>, vector<14x28xf32>
    %cst_35 = arith.constant dense<0.000000e+00> : vector<14x168xf32>
    %37 = tpu.matmul %36, %35, %cst_35 {dimension_numbers = #tpu.dot_dimension_numbers<[1], [0], [0], [1], [0, 0, 1, 1], [], []>} : vector<14x28xf32>, vector<28x168xf32>, vector<14x168xf32> -> vector<14x168xf32>
    %c0_36 = arith.constant 0 : index
    %c0_37 = arith.constant 0 : index
    %38 = vector.load %arg5[%c0_36, %c0_37] : memref<14x28xf32, #tpu.memory_space<vmem>>, vector<14x28xf32>
    %cst_38 = arith.constant dense<0.000000e+00> : vector<14x168xf32>
    %39 = tpu.matmul %38, %35, %cst_38 {dimension_numbers = #tpu.dot_dimension_numbers<[1], [0], [0], [1], [0, 0, 1, 1], [], []>} : vector<14x28xf32>, vector<28x168xf32>, vector<14x168xf32> -> vector<14x168xf32>
    %40 = arith.maximumf %37, %39 : vector<14x168xf32>
    %c0_39 = arith.constant 0 : index
    %c0_40 = arith.constant 0 : index
    %41 = vector.load %arg6[%c0_39, %c0_40] : memref<168x84xf32, #tpu.memory_space<vmem>>, vector<168x84xf32>
    %cst_41 = arith.constant dense<0.000000e+00> : vector<14x84xf32>
    %42 = tpu.matmul %40, %41, %cst_41 {dimension_numbers = #tpu.dot_dimension_numbers<[1], [0], [0], [1], [0, 0, 1, 1], [], []>} : vector<14x168xf32>, vector<168x84xf32>, vector<14x84xf32> -> vector<14x84xf32>
    %c0_42 = arith.constant 0 : index
    %c0_43 = arith.constant 0 : index
    %43 = vector.load %arg7[%c0_42, %c0_43] : memref<168x84xf32, #tpu.memory_space<vmem>>, vector<168x84xf32>
    %cst_44 = arith.constant dense<0.000000e+00> : vector<14x84xf32>
    %44 = tpu.matmul %40, %43, %cst_44 {dimension_numbers = #tpu.dot_dimension_numbers<[1], [0], [0], [1], [0, 0, 1, 1], [], []>} : vector<14x168xf32>, vector<168x84xf32>, vector<14x84xf32> -> vector<14x84xf32>
    %45 = arith.maximumf %42, %44 : vector<14x84xf32>
    %c0_45 = arith.constant 0 : index
    %c0_46 = arith.constant 0 : index
    %46 = vector.load %arg21[%c0_45, %c0_46] : memref<14x84xf32, #tpu.memory_space<vmem>>, vector<14x84xf32>
    tpu.vector_store %arg21[%c0_45, %c0_46], %45 {strides = array<i32>} : memref<14x84xf32, #tpu.memory_space<vmem>>, vector<14x84xf32>,
    %cst_47 = arith.constant 0.000000e+00 : f32
    %47 = vector.broadcast %cst_47 : f32 to vector<10x160xf32>
    %c0_48 = arith.constant 0 : index
    %c0_49 = arith.constant 0 : index
    %48 = vector.load %arg21[%c0_48, %c0_49] : memref<14x84xf32, #tpu.memory_space<vmem>>, vector<10x84xf32>
    %c0_50 = arith.constant 0 : index
    %c0_51 = arith.constant 0 : index
    %c0_52 = arith.constant 0 : index
    %49 = vector.load %arg8[%c0_50, %c0_51, %c0_52] : memref<5x84x160xf32, #tpu.memory_space<vmem>>, vector<1x84x160xf32>
    %50 = vector.shape_cast %49 : vector<1x84x160xf32> to vector<84x160xf32>
    %cst_53 = arith.constant dense<0.000000e+00> : vector<10x160xf32>
    %51 = tpu.matmul %48, %50, %cst_53 {dimension_numbers = #tpu.dot_dimension_numbers<[1], [0], [0], [1], [0, 0, 1, 1], [], []>} : vector<10x84xf32>, vector<84x160xf32>, vector<10x160xf32> -> vector<10x160xf32>
    %52 = arith.addf %47, %51 : vector<10x160xf32>
    %c1_54 = arith.constant 1 : index
    %c0_55 = arith.constant 0 : index
    %53 = vector.load %arg21[%c1_54, %c0_55] : memref<14x84xf32, #tpu.memory_space<vmem>>, vector<10x84xf32>
    %c1_56 = arith.constant 1 : index
    %c0_57 = arith.constant 0 : index
    %c0_58 = arith.constant 0 : index
    %54 = vector.load %arg8[%c1_56, %c0_57, %c0_58] : memref<5x84x160xf32, #tpu.memory_space<vmem>>, vector<1x84x160xf32>
    %55 = vector.shape_cast %54 : vector<1x84x160xf32> to vector<84x160xf32>
    %cst_59 = arith.constant dense<0.000000e+00> : vector<10x160xf32>
    %56 = tpu.matmul %53, %55, %cst_59 {dimension_numbers = #tpu.dot_dimension_numbers<[1], [0], [0], [1], [0, 0, 1, 1], [], []>} : vector<10x84xf32>, vector<84x160xf32>, vector<10x160xf32> -> vector<10x160xf32>
    %57 = arith.addf %52, %56 : vector<10x160xf32>
    %c2_60 = arith.constant 2 : index
    %c0_61 = arith.constant 0 : index
    %58 = vector.load %arg21[%c2_60, %c0_61] : memref<14x84xf32, #tpu.memory_space<vmem>>, vector<10x84xf32>
    %c2_62 = arith.constant 2 : index
    %c0_63 = arith.constant 0 : index
    %c0_64 = arith.constant 0 : index
    %59 = vector.load %arg8[%c2_62, %c0_63, %c0_64] : memref<5x84x160xf32, #tpu.memory_space<vmem>>, vector<1x84x160xf32>
    %60 = vector.shape_cast %59 : vector<1x84x160xf32> to vector<84x160xf32>
    %cst_65 = arith.constant dense<0.000000e+00> : vector<10x160xf32>
    %61 = tpu.matmul %58, %60, %cst_65 {dimension_numbers = #tpu.dot_dimension_numbers<[1], [0], [0], [1], [0, 0, 1, 1], [], []>} : vector<10x84xf32>, vector<84x160xf32>, vector<10x160xf32> -> vector<10x160xf32>
    %62 = arith.addf %57, %61 : vector<10x160xf32>
    %c3_66 = arith.constant 3 : index
    %c0_67 = arith.constant 0 : index
    %63 = vector.load %arg21[%c3_66, %c0_67] : memref<14x84xf32, #tpu.memory_space<vmem>>, vector<10x84xf32>
    %c3_68 = arith.constant 3 : index
    %c0_69 = arith.constant 0 : index
    %c0_70 = arith.constant 0 : index
    %64 = vector.load %arg8[%c3_68, %c0_69, %c0_70] : memref<5x84x160xf32, #tpu.memory_space<vmem>>, vector<1x84x160xf32>
    %65 = vector.shape_cast %64 : vector<1x84x160xf32> to vector<84x160xf32>
    %cst_71 = arith.constant dense<0.000000e+00> : vector<10x160xf32>
    %66 = tpu.matmul %63, %65, %cst_71 {dimension_numbers = #tpu.dot_dimension_numbers<[1], [0], [0], [1], [0, 0, 1, 1], [], []>} : vector<10x84xf32>, vector<84x160xf32>, vector<10x160xf32> -> vector<10x160xf32>
    %67 = arith.addf %62, %66 : vector<10x160xf32>
    %c4_72 = arith.constant 4 : index
    %c0_73 = arith.constant 0 : index
    %68 = vector.load %arg21[%c4_72, %c0_73] : memref<14x84xf32, #tpu.memory_space<vmem>>, vector<10x84xf32>
    %c4_74 = arith.constant 4 : index
    %c0_75 = arith.constant 0 : index
    %c0_76 = arith.constant 0 : index
    %69 = vector.load %arg8[%c4_74, %c0_75, %c0_76] : memref<5x84x160xf32, #tpu.memory_space<vmem>>, vector<1x84x160xf32>
    %70 = vector.shape_cast %69 : vector<1x84x160xf32> to vector<84x160xf32>
    %cst_77 = arith.constant dense<0.000000e+00> : vector<10x160xf32>
    %71 = tpu.matmul %68, %70, %cst_77 {dimension_numbers = #tpu.dot_dimension_numbers<[1], [0], [0], [1], [0, 0, 1, 1], [], []>} : vector<10x84xf32>, vector<84x160xf32>, vector<10x160xf32> -> vector<10x160xf32>
    %72 = arith.addf %67, %71 : vector<10x160xf32>
    %c0_78 = arith.constant 0 : index
    %c0_79 = arith.constant 0 : index
    %73 = vector.load %arg9[%c0_78, %c0_79] : memref<1x160xf32, #tpu.memory_space<vmem>>, vector<1x160xf32>
    %74 = vector.broadcast %73 : vector<1x160xf32> to vector<10x160xf32>
    %75 = arith.addf %72, %74 : vector<10x160xf32>
    %cst_80 = arith.constant 0.000000e+00 : f32
    %76 = vector.broadcast %cst_80 : f32 to vector<10x160xf32>
    %77 = arith.maximumf %75, %76 : vector<10x160xf32>
    %c0_81 = arith.constant 0 : index
    %c0_82 = arith.constant 0 : index
    %78 = vector.load %arg10[%c0_81, %c0_82] : memref<5x10xf32, #tpu.memory_space<vmem>>, vector<5x10xf32>
    %cst_83 = arith.constant dense<0.000000e+00> : vector<5x160xf32>
    %79 = tpu.matmul %78, %77, %cst_83 {dimension_numbers = #tpu.dot_dimension_numbers<[1], [0], [0], [1], [0, 0, 1, 1], [], []>} : vector<5x10xf32>, vector<10x160xf32>, vector<5x160xf32> -> vector<5x160xf32>
    %c0_84 = arith.constant 0 : index
    %c0_85 = arith.constant 0 : index
    %80 = vector.load %arg11[%c0_84, %c0_85] : memref<5x10xf32, #tpu.memory_space<vmem>>, vector<5x10xf32>
    %cst_86 = arith.constant dense<0.000000e+00> : vector<5x160xf32>
    %81 = tpu.matmul %80, %77, %cst_86 {dimension_numbers = #tpu.dot_dimension_numbers<[1], [0], [0], [1], [0, 0, 1, 1], [], []>} : vector<5x10xf32>, vector<10x160xf32>, vector<5x160xf32> -> vector<5x160xf32>
    %82 = arith.maximumf %79, %81 : vector<5x160xf32>
    %c0_87 = arith.constant 0 : index
    %c0_88 = arith.constant 0 : index
    %83 = vector.load %arg12[%c0_87, %c0_88] : memref<160x80xf32, #tpu.memory_space<vmem>>, vector<160x80xf32>
    %cst_89 = arith.constant dense<0.000000e+00> : vector<5x80xf32>
    %84 = tpu.matmul %82, %83, %cst_89 {dimension_numbers = #tpu.dot_dimension_numbers<[1], [0], [0], [1], [0, 0, 1, 1], [], []>} : vector<5x160xf32>, vector<160x80xf32>, vector<5x80xf32> -> vector<5x80xf32>
    %c0_90 = arith.constant 0 : index
    %c0_91 = arith.constant 0 : index
    %85 = vector.load %arg13[%c0_90, %c0_91] : memref<160x80xf32, #tpu.memory_space<vmem>>, vector<160x80xf32>
    %cst_92 = arith.constant dense<0.000000e+00> : vector<5x80xf32>
    %86 = tpu.matmul %82, %85, %cst_92 {dimension_numbers = #tpu.dot_dimension_numbers<[1], [0], [0], [1], [0, 0, 1, 1], [], []>} : vector<5x160xf32>, vector<160x80xf32>, vector<5x80xf32> -> vector<5x80xf32>
    %87 = arith.maximumf %84, %86 : vector<5x80xf32>
    %c0_93 = arith.constant 0 : index
    %c0_94 = arith.constant 0 : index
    %88 = vector.load %arg22[%c0_93, %c0_94] : memref<5x80xf32, #tpu.memory_space<vmem>>, vector<5x80xf32>
    tpu.vector_store %arg22[%c0_93, %c0_94], %87 {strides = array<i32>} : memref<5x80xf32, #tpu.memory_space<vmem>>, vector<5x80xf32>,
    %c0_95 = arith.constant 0 : index
    %c0_96 = arith.constant 0 : index
    %89 = vector.load %arg15[%c0_95, %c0_96] : memref<1x120xf32, #tpu.memory_space<vmem>>, vector<1x120xf32>
    %c0_97 = arith.constant 0 : index
    %c0_98 = arith.constant 0 : index
    %90 = vector.load %arg22[%c0_97, %c0_98] : memref<5x80xf32, #tpu.memory_space<vmem>>, vector<1x80xf32>
    %c0_99 = arith.constant 0 : index
    %c0_100 = arith.constant 0 : index
    %c0_101 = arith.constant 0 : index
    %91 = vector.load %arg14[%c0_99, %c0_100, %c0_101] : memref<5x80x120xf32, #tpu.memory_space<vmem>>, vector<1x80x120xf32>
    %92 = vector.shape_cast %91 : vector<1x80x120xf32> to vector<80x120xf32>
    %cst_102 = arith.constant dense<0.000000e+00> : vector<1x120xf32>
    %93 = tpu.matmul %90, %92, %cst_102 {dimension_numbers = #tpu.dot_dimension_numbers<[1], [0], [0], [1], [0, 0, 1, 1], [], []>} : vector<1x80xf32>, vector<80x120xf32>, vector<1x120xf32> -> vector<1x120xf32>
    %94 = arith.addf %89, %93 : vector<1x120xf32>
    %c1_103 = arith.constant 1 : index
    %c0_104 = arith.constant 0 : index
    %95 = vector.load %arg22[%c1_103, %c0_104] : memref<5x80xf32, #tpu.memory_space<vmem>>, vector<1x80xf32>
    %c1_105 = arith.constant 1 : index
    %c0_106 = arith.constant 0 : index
    %c0_107 = arith.constant 0 : index
    %96 = vector.load %arg14[%c1_105, %c0_106, %c0_107] : memref<5x80x120xf32, #tpu.memory_space<vmem>>, vector<1x80x120xf32>
    %97 = vector.shape_cast %96 : vector<1x80x120xf32> to vector<80x120xf32>
    %cst_108 = arith.constant dense<0.000000e+00> : vector<1x120xf32>
    %98 = tpu.matmul %95, %97, %cst_108 {dimension_numbers = #tpu.dot_dimension_numbers<[1], [0], [0], [1], [0, 0, 1, 1], [], []>} : vector<1x80xf32>, vector<80x120xf32>, vector<1x120xf32> -> vector<1x120xf32>
    %99 = arith.addf %94, %98 : vector<1x120xf32>
    %c2_109 = arith.constant 2 : index
    %c0_110 = arith.constant 0 : index
    %100 = vector.load %arg22[%c2_109, %c0_110] : memref<5x80xf32, #tpu.memory_space<vmem>>, vector<1x80xf32>
    %c2_111 = arith.constant 2 : index
    %c0_112 = arith.constant 0 : index
    %c0_113 = arith.constant 0 : index
    %101 = vector.load %arg14[%c2_111, %c0_112, %c0_113] : memref<5x80x120xf32, #tpu.memory_space<vmem>>, vector<1x80x120xf32>
    %102 = vector.shape_cast %101 : vector<1x80x120xf32> to vector<80x120xf32>
    %cst_114 = arith.constant dense<0.000000e+00> : vector<1x120xf32>
    %103 = tpu.matmul %100, %102, %cst_114 {dimension_numbers = #tpu.dot_dimension_numbers<[1], [0], [0], [1], [0, 0, 1, 1], [], []>} : vector<1x80xf32>, vector<80x120xf32>, vector<1x120xf32> -> vector<1x120xf32>
    %104 = arith.addf %99, %103 : vector<1x120xf32>
    %c3_115 = arith.constant 3 : index
    %c0_116 = arith.constant 0 : index
    %105 = vector.load %arg22[%c3_115, %c0_116] : memref<5x80xf32, #tpu.memory_space<vmem>>, vector<1x80xf32>
    %c3_117 = arith.constant 3 : index
    %c0_118 = arith.constant 0 : index
    %c0_119 = arith.constant 0 : index
    %106 = vector.load %arg14[%c3_117, %c0_118, %c0_119] : memref<5x80x120xf32, #tpu.memory_space<vmem>>, vector<1x80x120xf32>
    %107 = vector.shape_cast %106 : vector<1x80x120xf32> to vector<80x120xf32>
    %cst_120 = arith.constant dense<0.000000e+00> : vector<1x120xf32>
    %108 = tpu.matmul %105, %107, %cst_120 {dimension_numbers = #tpu.dot_dimension_numbers<[1], [0], [0], [1], [0, 0, 1, 1], [], []>} : vector<1x80xf32>, vector<80x120xf32>, vector<1x120xf32> -> vector<1x120xf32>
    %109 = arith.addf %104, %108 : vector<1x120xf32>
    %c4_121 = arith.constant 4 : index
    %c0_122 = arith.constant 0 : index
    %110 = vector.load %arg22[%c4_121, %c0_122] : memref<5x80xf32, #tpu.memory_space<vmem>>, vector<1x80xf32>
    %c4_123 = arith.constant 4 : index
    %c0_124 = arith.constant 0 : index
    %c0_125 = arith.constant 0 : index
    %111 = vector.load %arg14[%c4_123, %c0_124, %c0_125] : memref<5x80x120xf32, #tpu.memory_space<vmem>>, vector<1x80x120xf32>
    %112 = vector.shape_cast %111 : vector<1x80x120xf32> to vector<80x120xf32>
    %cst_126 = arith.constant dense<0.000000e+00> : vector<1x120xf32>
    %113 = tpu.matmul %110, %112, %cst_126 {dimension_numbers = #tpu.dot_dimension_numbers<[1], [0], [0], [1], [0, 0, 1, 1], [], []>} : vector<1x80xf32>, vector<80x120xf32>, vector<1x120xf32> -> vector<1x120xf32>
    %114 = arith.addf %109, %113 : vector<1x120xf32>
    %cst_127 = arith.constant 0.000000e+00 : f32
    %115 = vector.broadcast %cst_127 : f32 to vector<1x120xf32>
    %116 = arith.maximumf %114, %115 : vector<1x120xf32>
    %c0_128 = arith.constant 0 : index
    %c0_129 = arith.constant 0 : index
    %117 = vector.load %arg16[%c0_128, %c0_129] : memref<120x84xf32, #tpu.memory_space<vmem>>, vector<120x84xf32>
    %cst_130 = arith.constant dense<0.000000e+00> : vector<1x84xf32>
    %118 = tpu.matmul %116, %117, %cst_130 {dimension_numbers = #tpu.dot_dimension_numbers<[1], [0], [0], [1], [0, 0, 1, 1], [], []>} : vector<1x120xf32>, vector<120x84xf32>, vector<1x84xf32> -> vector<1x84xf32>
    %c0_131 = arith.constant 0 : index
    %c0_132 = arith.constant 0 : index
    %119 = vector.load %arg17[%c0_131, %c0_132] : memref<1x84xf32, #tpu.memory_space<vmem>>, vector<1x84xf32>
    %120 = arith.addf %118, %119 : vector<1x84xf32>
    %cst_133 = arith.constant 0.000000e+00 : f32
    %121 = vector.broadcast %cst_133 : f32 to vector<1x84xf32>
    %122 = arith.maximumf %120, %121 : vector<1x84xf32>
    %c0_134 = arith.constant 0 : index
    %c0_135 = arith.constant 0 : index
    %123 = vector.load %arg18[%c0_134, %c0_135] : memref<84x128xf32, #tpu.memory_space<vmem>>, vector<84x128xf32>
    %cst_136 = arith.constant dense<0.000000e+00> : vector<1x128xf32>
    %124 = tpu.matmul %122, %123, %cst_136 {dimension_numbers = #tpu.dot_dimension_numbers<[1], [0], [0], [1], [0, 0, 1, 1], [], []>} : vector<1x84xf32>, vector<84x128xf32>, vector<1x128xf32> -> vector<1x128xf32>
    %c0_137 = arith.constant 0 : index
    %c0_138 = arith.constant 0 : index
    %125 = vector.load %arg19[%c0_137, %c0_138] : memref<1x128xf32, #tpu.memory_space<vmem>>, vector<1x128xf32>
    %126 = arith.addf %124, %125 : vector<1x128xf32>
    %c0_139 = arith.constant 0 : index
    %c0_140 = arith.constant 0 : index
    %c0_141 = arith.constant 0 : index
    %127 = vector.load %arg20[%c0_139, %c0_140, %c0_141] : memref<1x1x128xf32, #tpu.memory_space<vmem>>, vector<1x1x128xf32>
    %128 = vector.shape_cast %127 : vector<1x1x128xf32> to vector<1x128xf32>
    %129 = vector.shape_cast %126 : vector<1x128xf32> to vector<1x1x128xf32>
    tpu.vector_store %arg20[%c0_139, %c0_140, %c0_141], %129 {strides = array<i32>} : memref<1x1x128xf32, #tpu.memory_space<vmem>>, vector<1x1x128xf32>,
    return
  }
  func.func @transform_0(%arg0: i32) -> (i32, i32, i32) {
    %c0_i32 = arith.constant 0 : i32
    %c0_i32_0 = arith.constant 0 : i32
    %c0_i32_1 = arith.constant 0 : i32
    return %arg0, %c0_i32, %c0_i32_0 : i32, i32, i32
  }
  func.func @transform_1(%arg0: i32) -> (i32, i32, i32) {
    %c0_i32 = arith.constant 0 : i32
    %c0_i32_0 = arith.constant 0 : i32
    %c0_i32_1 = arith.constant 0 : i32
    %c0_i32_2 = arith.constant 0 : i32
    return %c0_i32, %c0_i32_0, %c0_i32_1 : i32, i32, i32
  }
  func.func @transform_2(%arg0: i32) -> (i32, i32) {
    %c0_i32 = arith.constant 0 : i32
    %c0_i32_0 = arith.constant 0 : i32
    %c0_i32_1 = arith.constant 0 : i32
    return %c0_i32, %c0_i32_0 : i32, i32
  }
  func.func @transform_3(%arg0: i32) -> (i32, i32) {
    %c0_i32 = arith.constant 0 : i32
    %c0_i32_0 = arith.constant 0 : i32
    %c0_i32_1 = arith.constant 0 : i32
    return %c0_i32, %c0_i32_0 : i32, i32
  }
  func.func @transform_4(%arg0: i32) -> (i32, i32) {
    %c0_i32 = arith.constant 0 : i32
    %c0_i32_0 = arith.constant 0 : i32
    %c0_i32_1 = arith.constant 0 : i32
    return %c0_i32, %c0_i32_0 : i32, i32
  }
  func.func @transform_5(%arg0: i32) -> (i32, i32) {
    %c0_i32 = arith.constant 0 : i32
    %c0_i32_0 = arith.constant 0 : i32
    %c0_i32_1 = arith.constant 0 : i32
    return %c0_i32, %c0_i32_0 : i32, i32
  }
  func.func @transform_6(%arg0: i32) -> (i32, i32) {
    %c0_i32 = arith.constant 0 : i32
    %c0_i32_0 = arith.constant 0 : i32
    %c0_i32_1 = arith.constant 0 : i32
    return %c0_i32, %c0_i32_0 : i32, i32
  }
  func.func @transform_7(%arg0: i32) -> (i32, i32, i32) {
    %c0_i32 = arith.constant 0 : i32
    %c0_i32_0 = arith.constant 0 : i32
    %c0_i32_1 = arith.constant 0 : i32
    %c0_i32_2 = arith.constant 0 : i32
    return %c0_i32, %c0_i32_0, %c0_i32_1 : i32, i32, i32
  }
  func.func @transform_8(%arg0: i32) -> (i32, i32) {
    %c0_i32 = arith.constant 0 : i32
    %c0_i32_0 = arith.constant 0 : i32
    %c0_i32_1 = arith.constant 0 : i32
    return %c0_i32, %c0_i32_0 : i32, i32
  }
  func.func @transform_9(%arg0: i32) -> (i32, i32) {
    %c0_i32 = arith.constant 0 : i32
    %c0_i32_0 = arith.constant 0 : i32
    %c0_i32_1 = arith.constant 0 : i32
    return %c0_i32, %c0_i32_0 : i32, i32
  }
  func.func @transform_10(%arg0: i32) -> (i32, i32) {
    %c0_i32 = arith.constant 0 : i32
    %c0_i32_0 = arith.constant 0 : i32
    %c0_i32_1 = arith.constant 0 : i32
    return %c0_i32, %c0_i32_0 : i32, i32
  }
  func.func @transform_11(%arg0: i32) -> (i32, i32) {
    %c0_i32 = arith.constant 0 : i32
    %c0_i32_0 = arith.constant 0 : i32
    %c0_i32_1 = arith.constant 0 : i32
    return %c0_i32, %c0_i32_0 : i32, i32
  }
  func.func @transform_12(%arg0: i32) -> (i32, i32) {
    %c0_i32 = arith.constant 0 : i32
    %c0_i32_0 = arith.constant 0 : i32
    %c0_i32_1 = arith.constant 0 : i32
    return %c0_i32, %c0_i32_0 : i32, i32
  }
  func.func @transform_13(%arg0: i32) -> (i32, i32, i32) {
    %c0_i32 = arith.constant 0 : i32
    %c0_i32_0 = arith.constant 0 : i32
    %c0_i32_1 = arith.constant 0 : i32
    %c0_i32_2 = arith.constant 0 : i32
    return %c0_i32, %c0_i32_0, %c0_i32_1 : i32, i32, i32
  }
  func.func @transform_14(%arg0: i32) -> (i32, i32) {
    %c0_i32 = arith.constant 0 : i32
    %c0_i32_0 = arith.constant 0 : i32
    %c0_i32_1 = arith.constant 0 : i32
    return %c0_i32, %c0_i32_0 : i32, i32
  }
  func.func @transform_15(%arg0: i32) -> (i32, i32) {
    %c0_i32 = arith.constant 0 : i32
    %c0_i32_0 = arith.constant 0 : i32
    %c0_i32_1 = arith.constant 0 : i32
    return %c0_i32, %c0_i32_0 : i32, i32
  }
  func.func @transform_16(%arg0: i32) -> (i32, i32) {
    %c0_i32 = arith.constant 0 : i32
    %c0_i32_0 = arith.constant 0 : i32
    %c0_i32_1 = arith.constant 0 : i32
    return %c0_i32, %c0_i32_0 : i32, i32
  }
  func.func @transform_17(%arg0: i32) -> (i32, i32) {
    %c0_i32 = arith.constant 0 : i32
    %c0_i32_0 = arith.constant 0 : i32
    %c0_i32_1 = arith.constant 0 : i32
    return %c0_i32, %c0_i32_0 : i32, i32
  }
  func.func @transform_18(%arg0: i32) -> (i32, i32) {
    %c0_i32 = arith.constant 0 : i32
    %c0_i32_0 = arith.constant 0 : i32
    %c0_i32_1 = arith.constant 0 : i32
    return %c0_i32, %c0_i32_0 : i32, i32
  }
  func.func @transform_19(%arg0: i32) -> (i32, i32, i32) {
    %c0_i32 = arith.constant 0 : i32
    %c0_i32_0 = arith.constant 0 : i32
    %c0_i32_1 = arith.constant 0 : i32
    return %arg0, %c0_i32, %c0_i32_0 : i32, i32, i32
  }
}

</mosaic_0001>

<bundles_post_ra>
// kernel: neuralnet_forward.1
= control target key start
LH: loop header
LB: loop body
LE: loop exit
PB: predicated region body
PF: predicated region fallthrough
CT: control target
= control target key end

     0   :  { %s6148_s0 = inlined_call_operand.vmem [shape: f32[2,32,96], index: 0, kind: input, shape index: {}]   ;;  %s6149_s1 = inlined_call_operand.vmem [shape: f32[5,96,168], index: 1, kind: input, shape index: {}]   ;;  %s6150_s2 = inlined_call_operand.vmem [shape: f32[1,168], index: 2, kind: input, shape index: {}]   ;;  %s6151_s3 = inlined_call_operand.vmem [shape: f32[14,28], index: 3, kind: input, shape index: {}]   ;;  %s6152_s4 = inlined_call_operand.vmem [shape: f32[14,28], index: 4, kind: input, shape index: {}]   ;;  %s6153_s5 = inlined_call_operand.vmem [shape: f32[168,84], index: 5, kind: input, shape index: {}]   ;;  %s6154_s6 = inlined_call_operand.vmem [shape: f32[168,84], index: 6, kind: input, shape index: {}]   ;;  %s6155_s7 = inlined_call_operand.vmem [shape: f32[5,84,160], index: 7, kind: input, shape index: {}]   ;;  %s6156_s8 = inlined_call_operand.vmem [shape: f32[1,160], index: 8, kind: input, shape index: {}]   ;;  %s6157_s9 = inlined_call_operand.vmem [shape: f32[5,10], index: 9, kind: input, shape index: {}]   ;;  %s6158_s10 = inlined_call_operand.vmem [shape: f32[5,10], index: 10, kind: input, shape index: {}]   ;;  %s6159_s11 = inlined_call_operand.vmem [shape: f32[160,80], index: 11, kind: input, shape index: {}]   ;;  %s6160_s12 = inlined_call_operand.vmem [shape: f32[160,80], index: 12, kind: input, shape index: {}]   ;;  %s6161_s13 = inlined_call_operand.vmem [shape: f32[5,80,120], index: 13, kind: input, shape index: {}]   ;;  %s6162_s14 = inlined_call_operand.vmem [shape: f32[1,120], index: 14, kind: input, shape index: {}]   ;;  %s6163_s15 = inlined_call_operand.vmem [shape: f32[120,84], index: 15, kind: input, shape index: {}]   ;;  %s6164_s16 = inlined_call_operand.vmem [shape: f32[1,84], index: 16, kind: input, shape index: {}]   ;;  %s6165_s17 = inlined_call_operand.vmem [shape: f32[84,128], index: 17, kind: input, shape index: {}]   ;;  %s6166_s18 = inlined_call_operand.vmem [shape: f32[1,128], index: 18, kind: input, shape index: {}]   ;;  %s6167_s19 = inlined_call_operand.hbm [shape: f32[2,1,128], index: 19, kind: output, shape index: {}]  }
   0x1   :  { %6177 = sst [smem:[#allocation13_spill]] %s6148_s0 }
   0x2   :  { %6178 = sst [smem:[#allocation14_spill]] %s6149_s1 }
   0x3   :  { %6179 = sst [smem:[#allocation15_spill]] %s6150_s2 }
   0x4   :  { %6180 = sst [smem:[#allocation16_spill]] %s6151_s3 }
   0x5   :  { %6181 = sst [smem:[#allocation17_spill]] %s6166_s18 }
   0x6   :  { %6182 = sst [smem:[#allocation18_spill]] %s6167_s19 }
   0x7   :  { %24 = vsyncpa [#allocation5], 0 }
   0x8   :  { %26 = vsyncpa [#allocation5 + $0x1], 0  ;;  %s4627_s0 = smov 0   ;;  %s4629_s30 = smov 0  }
   0x9   :  { %s4631_s20 = smov 0   ;;  %s4633_s21 = smov 0  }
   0xa LB: > { %6183 = sst [smem:[#allocation7_spill]] %s4508_s0  ;;  %s4648_s1 = sadd.s32 4294967295, %s4520_s21   ;;  %s4520_s21 = sphi %s4633_s21, %s6201_s21   ;;  %s4516_s20 = sphi %s4631_s20, %s6203_s20   ;;  %s4512_s30 = sphi %s4629_s30, %s6205_s30   ;;  %s4508_s0 = sphi %s4627_s0, %s6204_s0  }
   0xb   : > { %6184 = sst [smem:[#allocation8_spill]] %s4516_s20  ;;  %s3317_s22 = sadd.s32 4294967294, %s4520_s21  }
   0xc   : > { %6185 = sst [smem:[#allocation9_spill]] %s4520_s21  ;;  %s4652_s2 = sadd.s32 1, %s4520_s21  }
   0xd   : > { %6186 = sst [smem:[#allocation10_spill]] %s4652_s2  ;;  %s443_s23 = sadd.s32 1, %s4516_s20 }
   0xe   : > { %s440_s24 = ssub.s32 %s4520_s21, %s4652_s2  ;;  %p453_p0 = scmp.ne.s32.totalorder %s4516_s20, %s4512_s30 }
   0xf   : > { %p441_p1 = scmp.eq.s32.totalorder %s440_s24, 0  ;;  %p454_p2 = scmp.eq.s32.totalorder %s4648_s1, 1 }
  0x10   : > { %p459_p3 = scmp.ne.s32.totalorder %s4512_s30, %s4508_s0  ;;  %p460_p4 = scmp.eq.s32.totalorder %s3317_s22, 1 }
  0x11   : > { %s4663_s25 = scalar_select %p441_p1, %s4516_s20, %s443_s23  }
  0x12   : > { %p4665_p5 = por %p454_p2, %p453_p0  ;;  %p4669_p6 = por %p460_p4, %p459_p3 }
  0x13   : > { %6187 = sst [smem:[#allocation11_spill]] %s4663_s25  ;;  %p3320_p7 = scmp.ge.s32.totalorder %s4520_s21, 1 }
  0x14   : > { %s6189_s26 = scalar_select %p4669_p6, 1, 0 }
  0x15   : > { %p540_p8 = scmp.lt.s32.totalorder %s4520_s21, 3 }
  0x16   : > { %6190 = sst [smem:[#allocation12_spill]] %s6189_s26 }
  0x17   : > { %p541_p9 = pnand %p3320_p7, %p540_p8 }
  0x18   : > { %s6191_s29 = sld [smem:[#allocation14_spill]] (!%p541_p9)  ;;  %v4522_v7 = vmov (!%p541_p9), 0.0   ;;  %p595_p10 = scmp.lt.s32.totalorder (!%p541_p9), %s4648_s1, 1  ;;  %vm657_vm0 = vcmask (!%p541_p9), 785408   ;;  %vm1311_vm1 = vcmask (!%p541_p9), 1043456   ;;  %vm4523_vm2 = vmmov (!%p541_p9), 1  }
  0x19   : > { %544 = sbr.rel (%p541_p9) target bundleno = 2394 (0x95a), region = 96  ;;  %734 = vmatprep.mubr.f32.mxu0 (!%p541_p9), %v4522_v7  ;;  %1382 = vmatprep.mubr.f32.mxu1 (!%p541_p9), %v4522_v7  ;;  %s6192_s28 = sld [smem:[#allocation13_spill]] (!%p541_p9)  ;;  %vm4000_vm3 = vmpackc.low (!%p541_p9), %vm1311_vm1, %vm4523_vm2  ;;  %vm1304_vm4 = vcmask (!%p541_p9), 228352   ;;  %vm1505_vm5 = vcmask (!%p541_p9), 326656   ;;  %vm1685_vm6 = vcmask (!%p541_p9), 687104   ;;  %vm1687_vm7 = vcmask (!%p541_p9), 685056  }
  0x1a   : > { %s6193_s25 = sld [smem:[#allocation15_spill]] (!%p541_p9)  ;;  %s6194_s20 = sld [smem:[#allocation16_spill]] (!%p541_p9)  ;;  %vm2295_vm8 = vcmask (!%p541_p9), 1041408   ;;  %vm2291_vm10 = vcmask (!%p541_p9), 80896   ;;  %vm2470_vm11 = vcmask (!%p541_p9), 261120   ;;  %vm4525_vm12 = vmmov (!%p541_p9), 0  }
  0x1b   : > { %vm4176_vm9 = vmpackc.low (!%p541_p9), %vm2295_vm8, %vm4523_vm2  ;;  %vm2635_vm13 = vcmask (!%p541_p9), 651264   ;;  %vm2649_vm14 = vcmask (!%p541_p9), 654336   ;;  %vm3085_vm15 = vcmask (!%p541_p9), 982016   ;;  %s593_s18 = sand.u32 (!%p541_p9), 1, %s4512_s30   ;;  %s6196_s21 = sld [smem:[#allocation17_spill]] (!%p541_p9) }
  0x1c   : > { %s594_s24 = scalar_lea.vmem (!%p541_p9), [#allocation4], %s593_s18 }
  0x1e   : > { %v3324_v0 = vld [vmem:[%s6191_s29 + $0xc8] sm:$0xff] (!%p541_p9)  ;;  %v3326_v1 = vld [vmem:[%s6191_s29 + $0xd8] sm:$0xff] (!%p541_p9)  ;;  %v3323_v2 = vld [vmem:[%s6191_s29 + $0xc0] sm:$0xff] (!%p541_p9) }
  0x1f   : > { %v3875_v3 = vpack.c.bf16 (!%p541_p9), %v3326_v1, %v3324_v0  ;;  %v3325_v4 = vld [vmem:[%s6191_s29 + $0xd0] sm:$0xff] (!%p541_p9)  ;;  %v3328_v5 = vld [vmem:[%s6191_s29 + $0xe8] sm:$0xff] (!%p541_p9)  ;;  %v3330_v6 = vld [vmem:[%s6191_s29 + $0xf8] sm:$0xff] (!%p541_p9) }
  0x20   : > { %v3877_v8 = vpack.c.bf16 %v3325_v4, %v3323_v2  ;;  %v3879_v9 = vpack.c.bf16 %v3330_v6, %v3328_v5  ;;  %v3327_v10 = vld [vmem:[%s6191_s29 + $0xe0] sm:$0xff]  ;;  %v3329_v11 = vld [vmem:[%s6191_s29 + $0xf0] sm:$0xff]  ;;  %v3332_v12 = vld [vmem:[%s6191_s29 + $0x108] sm:$0xff]  ;;  %s596_s27 = scalar_select %p595_p10, %s4648_s1, 1 }
  0x21   : > { %3876 = vmatprep.subr.bf16.mxu0 %v3875_v3  ;;  %v3334_v13 = vld [vmem:[%s6191_s29 + $0x118] sm:$0xff]  ;;  %v3881_v14 = vpack.c.bf16 %v3329_v11, %v3327_v10  ;;  %v3331_v16 = vld [vmem:[%s6191_s29 + $0x100] sm:$0xff]  ;;  %v3333_v17 = vld [vmem:[%s6191_s29 + $0x110] sm:$0xff]  ;;  %s6195_s2 = smov %s6194_s20 }
  0x22   : > { %3878 = vmatpush1.bf16.msra.mxu0 %v3877_v8  ;;  %v3883_v15 = vpack.c.bf16 %v3334_v13, %v3332_v12  ;;  %v3336_v18 = vld [vmem:[%s6191_s29 + $0x128] sm:$0xff]  ;;  %v3338_v19 = vld [vmem:[%s6191_s29 + $0x138] sm:$0xff]  ;;  %v3885_v20 = vpack.c.bf16 %v3333_v17, %v3331_v16  ;;  %v3335_v22 = vld [vmem:[%s6191_s29 + $0x120] sm:$0xff]  ;;  %s3618_s22 = sshll.u32 %s596_s27, 5  ;;  %s3615_s27 = sshll.u32 %s4648_s1, 4 }
  0x23   : > { %3880 = vmatprep.subr.bf16.mxu0 %v3879_v9  ;;  %v3887_v21 = vpack.c.bf16 %v3338_v19, %v3336_v18  ;;  %v3337_v23 = vld [vmem:[%s6191_s29 + $0x130] sm:$0xff]  ;;  %v3340_v24 = vld [vmem:[%s6191_s29 + $0x148] sm:$0xff]  ;;  %v3342_v25 = vld [vmem:[%s6191_s29 + $0x158] sm:$0xff]  ;;  %s4760_s19 = scalar_lea.vmem %s6192_s28, %s3618_s22  ;;  %s3262_s22 = sshll.u32 %s594_s24, 4  ;;  %s6108_s22 = int_to_ptr.vmem [resolvable:$true] %s3262_s22 }
  0x24   : > { %v3889_v26 = vpack.c.bf16 %v3337_v23, %v3335_v22  ;;  %v3891_v27 = vpack.c.bf16 %v3342_v25, %v3340_v24  ;;  %v3339_v28 = vld [vmem:[%s6191_s29 + $0x140] sm:$0xff]  ;;  %v3341_v29 = vld [vmem:[%s6191_s29 + $0x150] sm:$0xff]  ;;  %v3344_v30 = vld [vmem:[%s6191_s29 + $0x168] sm:$0xff]  ;;  %s4458_s0 = scalar_lea.vmem %s6108_s22, 16  ;;  %s4526_s1 = smov [#allocation4]  }
  0x25   : > { %v3346_v31 = vld [vmem:[%s6191_s29 + $0x178] sm:$0xff]  ;;  %v3893_v32 = vpack.c.bf16 %v3341_v29, %v3339_v28  ;;  %v3343_v34 = vld [vmem:[%s6191_s29 + $0x160] sm:$0xff]  ;;  %v3345_v35 = vld [vmem:[%s6191_s29 + $0x170] sm:$0xff]  ;;  %p4459_p11 = scmp.ne.s32.totalorder %s6108_s22, %s4458_s0  ;;  %s4462_s26 = sshll.u32 %s4526_s1, 4  ;;  %s4463_s26 = int_to_ptr.vmem [resolvable:$false] %s4462_s26 }
  0x26   : > { %3882 = vmatpush1.bf16.msra.mxu0 %v3881_v14  ;;  %v3895_v33 = vpack.c.bf16 %v3346_v31, %v3344_v30  ;;  %v605_v36 = vld [vmem:[%s6191_s29 + $0x8] sm:$0xff]  ;;  %v607_v37 = vld [vmem:[%s6191_s29 + $0x18] sm:$0xff]  ;;  %v3897_v38 = vpack.c.bf16 %v3345_v35, %v3343_v34  ;;  %v604_v40 = vld [vmem:[%s6191_s29] sm:$0xff]  ;;  %p4465_p0 = scmp.lt.s32.totalorder %s6108_s22, %s4463_s26 }
  0x27   : > { %3884 = vmatprep.subr.bf16.mxu0 %v3883_v15  ;;  %v3899_v39 = vpack.c.bf16 %v607_v37, %v605_v36  ;;  %v606_v41 = vld [vmem:[%s6191_s29 + $0x10] sm:$0xff]  ;;  %v609_v42 = vld [vmem:[%s6191_s29 + $0x28] sm:$0xff]  ;;  %v611_v43 = vld [vmem:[%s6191_s29 + $0x38] sm:$0xff]  ;;  %p4460_p12 = pnand %p4459_p11, %p4665_p5 }
  0x28   : > { %v628_v44 = vld [vmem:[%s4760_s19 + $0x1] sm:$0xff]  ;;  %v3901_v45 = vpack.c.bf16 %v606_v41, %v604_v40  ;;  %v3903_v46 = vpack.c.bf16 %v611_v43, %v609_v42  ;;  %v610_v48 = vld [vmem:[%s6191_s29 + $0x30] sm:$0xff]  ;;  %v615_v50 = vld [vmem:[%s6191_s29 + $0x58] sm:$0xff] }
  0x29   : > { %v608_v47 = vld [vmem:[%s6191_s29 + $0x20] sm:$0xff]  ;;  %v613_v49 = vld [vmem:[%s6191_s29 + $0x48] sm:$0xff]  ;;  %v614_v55 = vld [vmem:[%s6191_s29 + $0x50] sm:$0xff]  ;;  %p4461_p13 = pneg %p4460_p12 }
  0x2a   : > { %3886 = vmatpush1.bf16.msra.mxu0 %v3885_v20  ;;  %v3905_v51 = vpack.c.bf16 %v610_v48, %v608_v47  ;;  %v629_v52 = vld [vmem:[%s4760_s19 + $0x9] sm:$0xff]  ;;  %v3907_v53 = vpack.c.bf16 %v615_v50, %v613_v49  ;;  %v612_v54 = vld [vmem:[%s6191_s29 + $0x40] sm:$0xff]  ;;  %v619_v57 = vld [vmem:[%s6191_s29 + $0x78] sm:$0xff] }
  0x2b   : > { %3888 = vmatprep.subr.bf16.mxu0 %v3887_v21  ;;  %v617_v56 = vld [vmem:[%s6191_s29 + $0x68] sm:$0xff]  ;;  %v3909_v58 = vpack.c.bf16 %v614_v55, %v612_v54  ;;  %v630_v59 = vld [vmem:[%s4760_s19 + $0x11] sm:$0xff]  ;;  %v616_v61 = vld [vmem:[%s6191_s29 + $0x60] sm:$0xff] }
  0x2c   : > { %v3911_v60 = vpack.c.bf16 %v619_v57, %v617_v56  ;;  %v618_v62 = vld [vmem:[%s6191_s29 + $0x70] sm:$0xff]  ;;  %v621_v63 = vld [vmem:[%s6191_s29 + $0x88] sm:$0xff]  ;;  %v623_v0 = vld [vmem:[%s6191_s29 + $0x98] sm:$0xff] }
  0x2d   : > { %v3913_v1 = vpack.c.bf16 %v618_v62, %v616_v61  ;;  %v631_v2 = vld [vmem:[%s4760_s19 + $0x19] sm:$0xf]  ;;  %v3915_v3 = vpack.c.bf16 %v623_v0, %v621_v63  ;;  %v620_v4 = vld [vmem:[%s6191_s29 + $0x80] sm:$0xff]  ;;  %v622_v5 = vld [vmem:[%s6191_s29 + $0x90] sm:$0xff] }
  0x2e   : > { %3890 = vmatpush1.bf16.msra.mxu0 %v3889_v26  ;;  %v625_v6 = vld [vmem:[%s6191_s29 + $0xa8] sm:$0xff]  ;;  %v627_v8 = vld [vmem:[%s6191_s29 + $0xb8] sm:$0xff]  ;;  %v3917_v9 = vpack.c.bf16 %v622_v5, %v620_v4  ;;  %v624_v11 = vld [vmem:[%s6191_s29 + $0xa0] sm:$0xff] }
  0x2f   : > { %3892 = vmatprep.subr.bf16.mxu0 %v3891_v27  ;;  %v3919_v10 = vpack.c.bf16 %v627_v8, %v625_v6  ;;  %v626_v12 = vld [vmem:[%s6191_s29 + $0xb0] sm:$0xff]  ;;  %v3356_v13 = vld [vmem:[%s6191_s29 + $0x188] sm:$0xff]  ;;  %v3358_v14 = vld [vmem:[%s6191_s29 + $0x198] sm:$0xff] }
  0x30   : > { %v3921_v15 = vpack.c.bf16 %v626_v12, %v624_v11  ;;  %v3923_v16 = vpack.c.bf16 %v3358_v14, %v3356_v13  ;;  %v3355_v17 = vld [vmem:[%s6191_s29 + $0x180] sm:$0xff]  ;;  %v3357_v18 = vld [vmem:[%s6191_s29 + $0x190] sm:$0xff]  ;;  %v3360_v19 = vld [vmem:[%s6191_s29 + $0x1a8] sm:$0xff] }
  0x31   : > { %v3362_v20 = vld [vmem:[%s6191_s29 + $0x1b8] sm:$0xff]  ;;  %v600_v21 = vld [vmem:[%s4760_s19] sm:$0xff]  ;;  %v3925_v22 = vpack.c.bf16 %v3357_v18, %v3355_v17  ;;  %v3361_v25 = vld [vmem:[%s6191_s29 + $0x1b0] sm:$0xff] }
  0x32   : > { %3894 = vmatpush1.bf16.msra.mxu0 %v3893_v32  ;;  %v3927_v23 = vpack.c.bf16 %v3362_v20, %v3360_v19  ;;  %v3359_v24 = vld [vmem:[%s6191_s29 + $0x1a0] sm:$0xff]  ;;  %v3364_v26 = vld [vmem:[%s6191_s29 + $0x1c8] sm:$0xff]  ;;  %v3366_v27 = vld [vmem:[%s6191_s29 + $0x1d8] sm:$0xff] }
  0x33   : > { %3896 = vmatprep.subr.bf16.mxu0 %v3895_v33  ;;  %v3929_v28 = vpack.c.bf16 %v3361_v25, %v3359_v24  ;;  %v601_v29 = vld [vmem:[%s4760_s19 + $0x8] sm:$0xff]  ;;  %v3931_v30 = vpack.c.bf16 %v3366_v27, %v3364_v26  ;;  %v3363_v31 = vld [vmem:[%s6191_s29 + $0x1c0] sm:$0xff]  ;;  %v3365_v32 = vld [vmem:[%s6191_s29 + $0x1d0] sm:$0xff] }
  0x34   : > { %v3368_v33 = vld [vmem:[%s6191_s29 + $0x1e8] sm:$0xff]  ;;  %v3370_v34 = vld [vmem:[%s6191_s29 + $0x1f8] sm:$0xff]  ;;  %v3933_v35 = vpack.c.bf16 %v3365_v32, %v3363_v31  ;;  %v602_v36 = vld [vmem:[%s4760_s19 + $0x10] sm:$0xff] }
  0x35   : > { %v3935_v37 = vpack.c.bf16 %v3370_v34, %v3368_v33  ;;  %v3372_v40 = vld [vmem:[%s6191_s29 + $0x208] sm:$0xff]  ;;  %v3374_v41 = vld [vmem:[%s6191_s29 + $0x218] sm:$0xff]  ;;  %v3383_v57 = vld [vmem:[%s6191_s29 + $0x240] sm:$0xff] }
  0x36   : > { %3898 = vmatpush1.bf16.msra.mxu0 %v3897_v38  ;;  %v3367_v38 = vld [vmem:[%s6191_s29 + $0x1e0] sm:$0xff]  ;;  %v603_v43 = vld [vmem:[%s4760_s19 + $0x18] sm:$0xf]  ;;  %v3376_v47 = vld [vmem:[%s6191_s29 + $0x228] sm:$0xff] }
  0x37   : > { %3900 = vmatprep.subr.bf16.mxu0 %v3899_v39  ;;  %v3369_v39 = vld [vmem:[%s6191_s29 + $0x1f0] sm:$0xff]  ;;  %v3378_v48 = vld [vmem:[%s6191_s29 + $0x238] sm:$0xff]  ;;  %v860_v61 = vld [vmem:[%s4760_s19 + $0x2] sm:$0xff] }
  0x38   : > { %v3937_v42 = vpack.c.bf16 %v3369_v39, %v3367_v38  ;;  %v3943_v50 = vpack.c.bf16 %v3378_v48, %v3376_v47  ;;  %v3386_v54 = vld [vmem:[%s6191_s29 + $0x258] sm:$0xff]  ;;  %v3387_v0 = vld [vmem:[%s6191_s29 + $0x260] sm:$0xff]  ;;  %v861_v5 = vld [vmem:[%s4760_s19 + $0xa] sm:$0xff] }
  0x39   : > { %3347 = vmatmul.mubr.msk.f32.vlgmr.msra.gmra.mrb[0].mxu0 %vm657_vm0, %v628_v44  ;;  %v3939_v44 = vpack.c.bf16 %v3374_v41, %v3372_v40  ;;  %v3391_v8 = vld [vmem:[%s6191_s29 + $0x280] sm:$0xff]  ;;  %v3398_v11 = vld [vmem:[%s6191_s29 + $0x2b8] sm:$0xff]  ;;  %v3400_v17 = vld [vmem:[%s6191_s29 + $0x2c8] sm:$0xff] }
  0x3a   : > { %3902 = vmatpush1.bf16.msra.mxu0 %v3901_v45  ;;  %740 = vmatprep.mubr.f32.mxu0 %v4522_v7  ;;  %v3371_v45 = vld [vmem:[%s6191_s29 + $0x200] sm:$0xff]  ;;  %v862_v13 = vld [vmem:[%s4760_s19 + $0x12] sm:$0xff]  ;;  %v863_v20 = vld [vmem:[%s4760_s19 + $0x1a] sm:$0xf] }
  0x3b   : > { %3904 = vmatprep.subr.bf16.mxu0 %v3903_v46  ;;  %v3373_v46 = vld [vmem:[%s6191_s29 + $0x210] sm:$0xff]  ;;  %v3402_v18 = vld [vmem:[%s6191_s29 + $0x2d8] sm:$0xff]  ;;  %v3404_v24 = vld [vmem:[%s6191_s29 + $0x2e8] sm:$0xff] }
  0x3c   : > { %v3941_v49 = vpack.c.bf16 %v3373_v46, %v3371_v45  ;;  %v3406_v25 = vld [vmem:[%s6191_s29 + $0x2f8] sm:$0xff]  ;;  %v3411_v34 = vld [vmem:[%s6191_s29 + $0x300] sm:$0xff]  ;;  %v999_v46 = vld [vmem:[%s4760_s19 + $0xb] sm:$0xff] }
  0x3d   : > { %3348 = vmatmul.mubr.msk.f32.gmra.mrb[2].mxu0 %vm657_vm0, %v629_v52  ;;  %v3377_v52 = vld [vmem:[%s6191_s29 + $0x230] sm:$0xff]  ;;  %v3967_v27 = vpack.c.bf16 %v3406_v25, %v3404_v24  ;;  %v3414_v31 = vld [vmem:[%s6191_s29 + $0x318] sm:$0xff]  ;;  %v998_v38 = vld [vmem:[%s4760_s19 + $0x3] sm:$0xff] }
  0x3e   : > { %3906 = vmatpush1.bf16.msra.mxu0 %v3905_v51  ;;  %746 = vmatprep.mubr.f32.mxu0 %v4522_v7  ;;  %v3375_v51 = vld [vmem:[%s6191_s29 + $0x220] sm:$0xff] }
  0x3f   : > { %3908 = vmatprep.subr.bf16.mxu0 %v3907_v53  ;;  %v3384_v53 = vld [vmem:[%s6191_s29 + $0x248] sm:$0xff]  ;;  %v3945_v55 = vpack.c.bf16 %v3377_v52, %v3375_v51  ;;  %v3415_v41 = vld [vmem:[%s6191_s29 + $0x320] sm:$0xff]  ;;  %v3426_v51 = vld [vmem:[%s6191_s29 + $0x378] sm:$0xff] }
  0x40   : > { %v3947_v56 = vpack.c.bf16 %v3386_v54, %v3384_v53  ;;  %v3419_v48 = vld [vmem:[%s6191_s29 + $0x340] sm:$0xff]  ;;  %v1000_v53 = vld [vmem:[%s4760_s19 + $0x13] sm:$0xff] }
  0x41   : > { %3349 = vmatmul.mubr.msk.f32.gmra.mrb[4].mxu0 %vm657_vm0, %v630_v59  ;;  %v3388_v59 = vld [vmem:[%s6191_s29 + $0x268] sm:$0xff] }
  0x42   : > { %3910 = vmatpush1.bf16.msra.mxu0 %v3909_v58  ;;  %752 = vmatprep.mubr.f32.mxu0 %v4522_v7  ;;  %v3385_v58 = vld [vmem:[%s6191_s29 + $0x250] sm:$0xff] }
  0x43   : > { %3912 = vmatprep.subr.bf16.mxu0 %v3911_v60  ;;  %v3390_v60 = vld [vmem:[%s6191_s29 + $0x278] sm:$0xff]  ;;  %v3949_v62 = vpack.c.bf16 %v3385_v58, %v3383_v57  ;;  %v3428_v57 = vld [vmem:[%s6191_s29 + $0x388] sm:$0xff] }
  0x44   : > { %v3951_v63 = vpack.c.bf16 %v3390_v60, %v3388_v59  ;;  %v3430_v58 = vld [vmem:[%s6191_s29 + $0x398] sm:$0xff] }
  0x45   : > { %3350 = vmatmul.mubr.msk.f32.gmra.mrb[6].mxu0 %vm657_vm0, %v631_v2  ;;  %v3392_v2 = vld [vmem:[%s6191_s29 + $0x288] sm:$0xff]  ;;  %v1001_v60 = vld [vmem:[%s4760_s19 + $0x1b] sm:$0xf] }
  0x46   : > { %3914 = vmatpush1.bf16.msra.mxu0 %v3913_v1  ;;  %835 = vmatprep.mubr.f32.mxu0 %v4522_v7  ;;  %v3389_v1 = vld [vmem:[%s6191_s29 + $0x270] sm:$0xff] }
  0x47   : > { %3916 = vmatprep.subr.bf16.mxu0 %v3915_v3  ;;  %v3394_v3 = vld [vmem:[%s6191_s29 + $0x298] sm:$0xff]  ;;  %v3953_v4 = vpack.c.bf16 %v3389_v1, %v3387_v0  ;;  %v3432_v0 = vld [vmem:[%s6191_s29 + $0x3a8] sm:$0xff] }
  0x48   : > { %v3955_v6 = vpack.c.bf16 %v3394_v3, %v3392_v2  ;;  %v3434_v1 = vld [vmem:[%s6191_s29 + $0x3b8] sm:$0xff] }
  0x49   : > { %v3991_v3 = vpack.c.bf16 %v3434_v1, %v3432_v0  ;;  %v1492_v0 = vld [vmem:[%s6153_s5 + $0x40] sm:$0xff]  ;;  %v1493_v1 = vld [vmem:[%s6153_s5 + $0x48] sm:$0xff] }
  0x4a   : > { %3918 = vmatpush1.bf16.msra.mxu0 %v3917_v9  ;;  %v3393_v9 = vld [vmem:[%s6191_s29 + $0x290] sm:$0xff] }
  0x4b   : > { %3920 = vmatprep.subr.bf16.mxu0 %v3919_v10  ;;  %v3396_v10 = vld [vmem:[%s6191_s29 + $0x2a8] sm:$0xff]  ;;  %v3957_v12 = vpack.c.bf16 %v3393_v9, %v3391_v8 }
  0x4c   : > { %v3959_v14 = vpack.c.bf16 %v3398_v11, %v3396_v10  ;;  %v1136_v8 = vld [vmem:[%s4760_s19 + $0x4] sm:$0xff]  ;;  %v1137_v9 = vld [vmem:[%s4760_s19 + $0xc] sm:$0xff]  ;;  %v1138_v10 = vld [vmem:[%s4760_s19 + $0x14] sm:$0xff] }
  0x4d   : > { %v1139_v11 = vld [vmem:[%s4760_s19 + $0x1c] sm:$0xf]  ;;  %s6197_s19 = sld [smem:[#allocation18_spill]] }
  0x4e   : > { %3922 = vmatpush1.bf16.msra.mxu0 %v3921_v15  ;;  %v3395_v15 = vld [vmem:[%s6191_s29 + $0x2a0] sm:$0xff] }
  0x4f   : > { %3924 = vmatprep.subr.bf16.mxu0 %v3923_v16  ;;  %v3397_v16 = vld [vmem:[%s6191_s29 + $0x2b0] sm:$0xff] }
  0x50   : > { %v3961_v19 = vpack.c.bf16 %v3397_v16, %v3395_v15  ;;  %v1274_v15 = vld [vmem:[%s6193_s25] sm:$0x3] }
  0x51   : > { %3351 = vmatmul.mubr.msk.f32.vlgmr.msra.gmra.mrb[0].mxu0 %vm657_vm0, %v600_v21  ;;  %v3963_v21 = vpack.c.bf16 %v3402_v18, %v3400_v17 }
  0x52   : > { %3926 = vmatpush1.bf16.msra.mxu0 %v3925_v22  ;;  %841 = vmatprep.mubr.f32.mxu0 %v4522_v7  ;;  %v3399_v22 = vld [vmem:[%s6191_s29 + $0x2c0] sm:$0xff] }
  0x53   : > { %3928 = vmatprep.subr.bf16.mxu0 %v3927_v23  ;;  %v3401_v23 = vld [vmem:[%s6191_s29 + $0x2d0] sm:$0xff]  ;;  %s6106_s28 = scalar_lea.hbm %s6197_s19, %s3615_s27 }
  0x54   : > { %v3965_v26 = vpack.c.bf16 %v3401_v23, %v3399_v22 }
  0x55   : > { %3352 = vmatmul.mubr.msk.f32.gmra.mrb[2].mxu0 %vm657_vm0, %v601_v29  ;;  %v3405_v29 = vld [vmem:[%s6191_s29 + $0x2f0] sm:$0xff] }
  0x56   : > { %3930 = vmatpush1.bf16.msra.mxu0 %v3929_v28  ;;  %847 = vmatprep.mubr.f32.mxu0 %v4522_v7  ;;  %v3403_v28 = vld [vmem:[%s6191_s29 + $0x2e0] sm:$0xff] }
  0x57   : > { %3932 = vmatprep.subr.bf16.mxu0 %v3931_v30  ;;  %v3412_v30 = vld [vmem:[%s6191_s29 + $0x308] sm:$0xff]  ;;  %v3969_v32 = vpack.c.bf16 %v3405_v29, %v3403_v28 }
  0x58   : > { %v3971_v33 = vpack.c.bf16 %v3414_v31, %v3412_v30 }
  0x59   : > { %3353 = vmatmul.mubr.msk.f32.gmra.mrb[4].mxu0 %vm657_vm0, %v602_v36  ;;  %v3416_v36 = vld [vmem:[%s6191_s29 + $0x328] sm:$0xff] }
  0x5a   : > { %3934 = vmatpush1.bf16.msra.mxu0 %v3933_v35  ;;  %853 = vmatprep.mubr.f32.mxu0 %v4522_v7  ;;  %v3413_v35 = vld [vmem:[%s6191_s29 + $0x310] sm:$0xff] }
  0x5b   : > { %3936 = vmatprep.subr.bf16.mxu0 %v3935_v37  ;;  %v3418_v37 = vld [vmem:[%s6191_s29 + $0x338] sm:$0xff]  ;;  %v3973_v39 = vpack.c.bf16 %v3413_v35, %v3411_v34 }
  0x5c   : > { %v3975_v40 = vpack.c.bf16 %v3418_v37, %v3416_v36 }
  0x5d   : > { %3354 = vmatmul.mubr.msk.f32.gmra.mrb[6].mxu0 %vm657_vm0, %v603_v43  ;;  %v3420_v43 = vld [vmem:[%s6191_s29 + $0x348] sm:$0xff] }
  0x5e   : > { %3938 = vmatpush1.bf16.msra.mxu0 %v3937_v42  ;;  %965 = vmatprep.mubr.f32.mxu0 %v4522_v7  ;;  %v3417_v42 = vld [vmem:[%s6191_s29 + $0x330] sm:$0xff] }
  0x5f   : > { %3940 = vmatprep.subr.bf16.mxu0 %v3939_v44  ;;  %v3422_v44 = vld [vmem:[%s6191_s29 + $0x358] sm:$0xff]  ;;  %v3977_v45 = vpack.c.bf16 %v3417_v42, %v3415_v41 }
  0x60   : > { %v3979_v47 = vpack.c.bf16 %v3422_v44, %v3420_v43 }
  0x62   : > { %3942 = vmatpush1.bf16.msra.mxu0 %v3941_v49  ;;  %v3421_v49 = vld [vmem:[%s6191_s29 + $0x350] sm:$0xff] }
  0x63   : > { %3944 = vmatprep.subr.bf16.mxu0 %v3943_v50  ;;  %v3424_v50 = vld [vmem:[%s6191_s29 + $0x368] sm:$0xff]  ;;  %v3981_v52 = vpack.c.bf16 %v3421_v49, %v3419_v48  ;;  %v1484_v49 = vld [vmem:[%s6153_s5] sm:$0xff] }
  0x64   : > { %v3983_v54 = vpack.c.bf16 %v3426_v51, %v3424_v50  ;;  %v1303_v48 = vld [vmem:[%s6195_s2 + $0x8] sm:$0x3f]  ;;  %v1395_v51 = vld [vmem:[%s6152_s4] sm:$0xff] }
  0x65   : > { %v1485_v50 = vld [vmem:[%s6153_s5 + $0x8] sm:$0xff] }
  0x66   : > { %3946 = vmatpush1.bf16.msra.mxu0 %v3945_v55  ;;  %v3423_v55 = vld [vmem:[%s6191_s29 + $0x360] sm:$0xff] }
  0x67   : > { %3948 = vmatprep.subr.bf16.mxu0 %v3947_v56  ;;  %v3425_v56 = vld [vmem:[%s6191_s29 + $0x370] sm:$0xff] }
  0x68   : > { %v3985_v59 = vpack.c.bf16 %v3425_v56, %v3423_v55  ;;  %v1487_v55 = vld [vmem:[%s6153_s5 + $0x18] sm:$0xff]  ;;  %v1396_v56 = vld [vmem:[%s6152_s4 + $0x8] sm:$0x3f] }
  0x69   : > { %3379 = vmatmul.mubr.msk.f32.vlgmr.msra.gmra.mrb[0].mxu0 %vm657_vm0, %v860_v61  ;;  %v3987_v61 = vpack.c.bf16 %v3430_v58, %v3428_v57  ;;  %v1488_v58 = vld [vmem:[%s6153_s5 + $0x20] sm:$0xff] }
  0x6a   : > { %3950 = vmatpush1.bf16.msra.mxu0 %v3949_v62  ;;  %971 = vmatprep.mubr.f32.mxu0 %v4522_v7  ;;  %v3427_v62 = vld [vmem:[%s6191_s29 + $0x380] sm:$0xff] }
  0x6b   : > { %3952 = vmatprep.subr.bf16.mxu0 %v3951_v63  ;;  %v3429_v63 = vld [vmem:[%s6191_s29 + $0x390] sm:$0xff] }
  0x6c   : > { %v3989_v2 = vpack.c.bf16 %v3429_v63, %v3427_v62  ;;  %v1491_v62 = vld [vmem:[%s6153_s5 + $0x38] sm:$0xff] }
  0x6d   : > { %3380 = vmatmul.mubr.msk.f32.gmra.mrb[2].mxu0 %vm657_vm0, %v861_v5  ;;  %v3433_v5 = vld [vmem:[%s6191_s29 + $0x3b0] sm:$0xff] }
  0x6e   : > { %3954 = vmatpush1.bf16.msra.mxu0 %v3953_v4  ;;  %977 = vmatprep.mubr.f32.mxu0 %v4522_v7  ;;  %v3431_v4 = vld [vmem:[%s6191_s29 + $0x3a0] sm:$0xff] }
  0x6f   : > { %3956 = vmatprep.subr.bf16.mxu0 %v3955_v6  ;;  %v3993_v6 = vpack.c.bf16 %v3433_v5, %v3431_v4  ;;  %v1495_v4 = vld [vmem:[%s6153_s5 + $0x58] sm:$0xff] }
  0x71   : > { %3381 = vmatmul.mubr.msk.f32.gmra.mrb[4].mxu0 %vm657_vm0, %v862_v13 }
  0x72   : > { %3958 = vmatpush1.bf16.msra.mxu0 %v3957_v12  ;;  %983 = vmatprep.mubr.f32.mxu0 %v4522_v7  ;;  %v1276_v12 = vlaneseq }
  0x73   : > { %3960 = vmatprep.subr.bf16.mxu0 %v3959_v14 }
  0x74   : > { %v5104_v13 = vshrl.u32 %v1276_v12, 7 }
  0x75   : > { %3382 = vmatmul.mubr.msk.f32.gmra.mrb[6].mxu0 %vm657_vm0, %v863_v20 }
  0x76   : > { %3962 = vmatpush1.bf16.msra.mxu0 %v3961_v19  ;;  %1103 = vmatprep.mubr.f32.mxu0 %v4522_v7  ;;  %v1278_v14 = vsub.s32 0, %v5104_v13  ;;  %v1282_v16 = vsub.s32 1, %v5104_v13  ;;  %v2290_v13 = vld [vmem:[%s6157_s9] sm:$0x1f] }
  0x77   : > { %3964 = vmatprep.subr.bf16.mxu0 %v3963_v21 }
  0x78   : > { %v1279_v17 = vrot.slane %v1274_v15, %v1278_v14  ;;  %v1283_v19 = vrot.slane %v1274_v15, %v1282_v16  ;;  %v1500_v15 = vld [vmem:[%s6153_s5 + $0x80] sm:$0xff] }
  0x7a   : > { %3966 = vmatpush1.bf16.msra.mxu0 %v3965_v26 }
  0x7b   : > { %3968 = vmatprep.subr.bf16.mxu0 %v3967_v27 }
  0x7e   : > { %3970 = vmatpush1.bf16.msra.mxu0 %v3969_v32 }
  0x7f   : > { %3972 = vmatprep.subr.bf16.mxu0 %v3971_v33 }
  0x81   : > { %3407 = vmatmul.mubr.msk.f32.vlgmr.msra.gmra.mrb[0].mxu0 %vm657_vm0, %v998_v38 }
  0x82   : > { %3974 = vmatpush1.bf16.msra.mxu0 %v3973_v39  ;;  %1109 = vmatprep.mubr.f32.mxu0 %v4522_v7 }
  0x83   : > { %3976 = vmatprep.subr.bf16.mxu0 %v3975_v40 }
  0x85   : > { %3408 = vmatmul.mubr.msk.f32.gmra.mrb[2].mxu0 %vm657_vm0, %v999_v46 }
  0x86   : > { %3978 = vmatpush1.bf16.msra.mxu0 %v3977_v45  ;;  %1115 = vmatprep.mubr.f32.mxu0 %v4522_v7 }
  0x87   : > { %3980 = vmatprep.subr.bf16.mxu0 %v3979_v47  ;;  %v1302_v47 = vld [vmem:[%s6194_s20] sm:$0xff]  ;;  %s3250_s20 = scalar_lea.sflag [#allocation5], %s593_s18 }
  0x89   : > { %3409 = vmatmul.mubr.msk.f32.gmra.mrb[4].mxu0 %vm657_vm0, %v1000_v53  ;;  %v4524_v53 = vmov 0.0|0.0  }
  0x8a   : > { %3982 = vmatpush1.bf16.msra.mxu0 %v3981_v52  ;;  %1121 = vmatprep.mubr.f32.mxu0 %v4522_v7  ;;  %v4016_v52 = vpack.c.bf16 %v1485_v50, %v1484_v49  ;;  %v1597_v50 = vld [vmem:[%s6154_s6 + $0x50] sm:$0xff] }
  0x8b   : > { %3984 = vmatprep.subr.bf16.mxu0 %v3983_v54  ;;  %v1486_v54 = vld [vmem:[%s6153_s5 + $0x10] sm:$0xff] }
  0x8c   : > { %v4019_v57 = vpack.c.bf16 %v1487_v55, %v1486_v54  ;;  %v1599_v54 = vld [vmem:[%s6154_s6 + $0x60] sm:$0xff]  ;;  %v1600_v55 = vld [vmem:[%s6154_s6 + $0x68] sm:$0xff] }
  0x8d   : > { %3410 = vmatmul.mubr.msk.f32.gmra.mrb[6].mxu0 %vm657_vm0, %v1001_v60 }
  0x8e   : > { %3986 = vmatpush1.bf16.msra.mxu0 %v3985_v59  ;;  %1241 = vmatprep.mubr.f32.mxu0 %v4522_v7  ;;  %v1489_v59 = vld [vmem:[%s6153_s5 + $0x28] sm:$0xff] }
  0x8f   : > { %3988 = vmatprep.subr.bf16.mxu0 %v3987_v61  ;;  %v4022_v60 = vpack.c.bf16 %v1489_v59, %v1488_v58  ;;  %v1490_v61 = vld [vmem:[%s6153_s5 + $0x30] sm:$0xff]  ;;  %v1602_v58 = vld [vmem:[%s6154_s6 + $0x78] sm:$0xff] }
  0x90   : > { %v4025_v63 = vpack.c.bf16 %v1491_v62, %v1490_v61  ;;  %v1604_v61 = vld [vmem:[%s6154_s6 + $0x88] sm:$0xff] }
  0x92   : > { %3990 = vmatpush1.bf16.msra.mxu0 %v3989_v2  ;;  %v4028_v2 = vpack.c.bf16 %v1493_v1, %v1492_v0  ;;  %v1606_v0 = vld [vmem:[%s6154_s6 + $0x98] sm:$0xff] }
  0x93   : > { %3992 = vmatprep.subr.bf16.mxu0 %v3991_v3  ;;  %v1494_v3 = vld [vmem:[%s6153_s5 + $0x50] sm:$0xff] }
  0x94   : > { %v4031_v5 = vpack.c.bf16 %v1495_v4, %v1494_v3  ;;  %v1692_v3 = vld [vmem:[%s6155_s7 + $0x8] sm:$0xff]  ;;  %v1694_v4 = vld [vmem:[%s6155_s7 + $0x18] sm:$0xff] }
  0x96   : > { %3994 = vmatpush1.bf16.msra.mxu0 %v3993_v6  ;;  %v1496_v6 = vld [vmem:[%s6153_s5 + $0x60] sm:$0xff] }
  0x99   : > { %3435 = vmatmul.mubr.msk.f32.vlgmr.msra.gmra.mrb[0].mxu0 %vm657_vm0, %v1136_v8  ;;  %v1497_v8 = vld [vmem:[%s6153_s5 + $0x68] sm:$0xff] }
  0x9a   : > { %1247 = vmatprep.mubr.f32.mxu0 %v4522_v7 }
  0x9d   : > { %3436 = vmatmul.mubr.msk.f32.gmra.mrb[2].mxu0 %vm657_vm0, %v1137_v9  ;;  %v4034_v9 = vpack.c.bf16 %v1497_v8, %v1496_v6  ;;  %v4095_v6 = vpack.c.bf16 %v1694_v4, %v1692_v3  ;;  %v1693_v8 = vld [vmem:[%s6155_s7 + $0x10] sm:$0xff]  ;;  %v3469_v4 = vld [vmem:[%s6155_s7 + $0x140] sm:$0xff] }
  0x9e   : > { %1253 = vmatprep.mubr.f32.mxu0 %v4522_v7  ;;  %v3467_v3 = vld [vmem:[%s6155_s7 + $0x130] sm:$0xff] }
  0xa1   : > { %3437 = vmatmul.mubr.msk.f32.gmra.mrb[4].mxu0 %vm657_vm0, %v1138_v10  ;;  %v1498_v10 = vld [vmem:[%s6153_s5 + $0x70] sm:$0xff] }
  0xa2   : > { %1259 = vmatprep.mubr.f32.mxu0 %v4522_v7 }
  0xa5   : > { %3438 = vmatmul.mubr.msk.f32.gmra.mrb[6].mxu0 %vm657_vm0, %v1139_v11  ;;  %v1499_v11 = vld [vmem:[%s6153_s5 + $0x78] sm:$0xff] }
  0xa6   : > { %1814 = vmatprep.mubr.f32.mxu0 %v4522_v7  ;;  %v4037_v12 = vpack.c.bf16 %v1499_v11, %v1498_v10  ;;  %v1698_v10 = vld [vmem:[%s6155_s7 + $0x38] sm:$0xff] }
 0x16c   : > { %v1243_v18 = vpop.f32.mrb[0].mxu0 }
 0x16d   : > { %v1245_v20 = vpop.f32.mrb[1].mxu0  ;;  %v1286_v21 = vadd.f32 %v1279_v17, %v1243_v18 }
 0x16e   : > { %v1287_v22 = vadd.f32 %v1283_v19, %v1245_v20  ;;  %v1503_v20 = vld [vmem:[%s6153_s5 + $0x98] sm:$0xff] }
 0x16f   : > { %v1294_v27 = vmax.f32 %v1286_v21, 0.0 }
 0x170   : > { %v1249_v23 = vpop.f32.mrb[2].mxu0  ;;  %v1295_v29 = vmax.f32 %v1287_v22, 0.0  ;;  %v1504_v22 = vld [vmem:[%s6153_s5 + $0xa0] sm:$0xff] }
 0x171   : > { %v1288_v24 = vadd.f32 %v1279_v17, %v1249_v23  ;;  %v1251_v25 = vpop.f32.mrb[3].mxu0 }
 0x172   : > { %v1289_v26 = vadd.f32 %v1283_v19, %v1251_v25 }
 0x173   : > { %v1296_v28 = vmax.f32 %v1288_v24, 0.0 }
 0x174   : > { %v1297_v30 = vmax.f32 %v1289_v26, 0.0  ;;  %v1255_v31 = vpop.f32.mrb[4].mxu0 }
 0x175   : > { %v1257_v32 = vpop.f32.mrb[5].mxu0  ;;  %v3997_v33 = vpack.c.bf16 %v1296_v28, %v1294_v27  ;;  %v1290_v35 = vadd.f32 %v1279_v17, %v1255_v31  ;;  %v1587_v27 = vld [vmem:[%s6154_s6] sm:$0xff]  ;;  %v1588_v28 = vld [vmem:[%s6154_s6 + $0x8] sm:$0xff] }
 0x176   : > { %v3995_v34 = vpack.c.bf16 %v1297_v30, %v1295_v29  ;;  %v1291_v36 = vadd.f32 %v1283_v19, %v1257_v32 }
 0x177   : > { %v1298_v41 = vmax.f32 %v1290_v35, 0.0  ;;  %v1590_v35 = vld [vmem:[%s6154_s6 + $0x18] sm:$0xff] }
 0x178   : > { %v1261_v37 = vpop.f32.mrb[6].mxu0  ;;  %3996 = vmatprep.subr.bf16.mxu1 %v3995_v34  ;;  %v1299_v43 = vmax.f32 %v1291_v36, 0.0 }
 0x179   : > { %v1292_v38 = vadd.f32 %v1279_v17, %v1261_v37  ;;  %v1263_v39 = vpop.f32.mrb[7].mxu0  ;;  %3998 = vmatpush1.bf16.msra.mxu1 %v3997_v33  ;;  %v1501_v17 = vld [vmem:[%s6153_s5 + $0x88] sm:$0xff] }
 0x17a   : > { %v1293_v40 = vadd.f32 %v1283_v19, %v1263_v39  ;;  %v4040_v18 = vpack.c.bf16 %v1501_v17, %v1500_v15  ;;  %v1502_v19 = vld [vmem:[%s6153_s5 + $0x90] sm:$0xff]  ;;  %v3452_v15 = vld [vmem:[%s6155_s7 + $0xb8] sm:$0xff]  ;;  %v3454_v17 = vld [vmem:[%s6155_s7 + $0xc8] sm:$0xff] }
 0x17b   : > { %v1300_v42 = vmax.f32 %v1292_v38, 0.0  ;;  %v4043_v21 = vpack.c.bf16 %v1503_v20, %v1502_v19  ;;  %v4075_v19 = vpack.c.bf16 %v3454_v17, %v3452_v15  ;;  %v1697_v20 = vld [vmem:[%s6155_s7 + $0x30] sm:$0xff] }
 0x17c   : > { %v1301_v44 = vmax.f32 %v1293_v40, 0.0 }
 0x17d   : > { %v4002_v45 = vpack.c.bf16 %v1300_v42, %v1298_v41  ;;  %v1591_v41 = vld [vmem:[%s6154_s6 + $0x20] sm:$0xff]  ;;  %v1592_v42 = vld [vmem:[%s6154_s6 + $0x28] sm:$0xff]  ;;  %4076 = vmatprep.subr.bf16.mxu0 %v4075_v19 }
 0x17e   : > { %v3999_v46 = vpack.c.bf16 %v1301_v44, %v1299_v43  ;;  %v4052_v43 = vpack.c.bf16 %v1592_v42, %v1591_v41  ;;  %v1593_v44 = vld [vmem:[%s6154_s6 + $0x30] sm:$0xff]  ;;  %v3462_v41 = vld [vmem:[%s6155_s7 + $0x108] sm:$0xff]  ;;  %v1703_v42 = vld [vmem:[%s6155_s7 + $0x60] sm:$0xff] }
 0x180   : > { %4001 = vmatprep.subr.msk.bf16.mxu1 %vm4000_vm3, %v3999_v46 }
 0x181   : > { %4004 = vmatpush1.bf16.msk.msra.mxu1 %vm4000_vm3, %v4002_v45 }
 0x182   : > { %4006 = vmatprep.subr.bf16.mxu1 %v3995_v34  ;;  %v1589_v34 = vld [vmem:[%s6154_s6 + $0x10] sm:$0xff] }
 0x183   : > { %v4049_v40 = vpack.c.bf16 %v1590_v35, %v1589_v34  ;;  %v3457_v34 = vld [vmem:[%s6155_s7 + $0xe0] sm:$0xff] }
 0x184   : > { %3441 = vmatmul.mubr.msk.f32.vlgmr.msra.gmra.mrb[0].mxu1 %vm1304_vm4, %v1302_v47  ;;  %v1595_v47 = vld [vmem:[%s6154_s6 + $0x40] sm:$0xff] }
 0x185   : > { %4008 = vmatpush1.bf16.msra.mxu1 %v3997_v33  ;;  %1388 = vmatprep.mubr.f32.mxu1 %v4522_v7  ;;  %v4046_v33 = vpack.c.bf16 %v1588_v28, %v1587_v27  ;;  %v3456_v27 = vld [vmem:[%s6155_s7 + $0xd8] sm:$0xff] }
 0x186   : > { %4011 = vmatprep.subr.msk.bf16.mxu1 %vm4000_vm3, %v3999_v46 }
 0x188   : > { %3442 = vmatmul.mubr.msk.f32.gmra.mrb[2].mxu1 %vm1304_vm4, %v1303_v48  ;;  %v1596_v48 = vld [vmem:[%s6154_s6 + $0x48] sm:$0xff] }
 0x189   : > { %4014 = vmatpush1.bf16.msk.msra.mxu1 %vm4000_vm3, %v4002_v45  ;;  %1467 = vmatprep.mubr.f32.mxu1 %v4522_v7  ;;  %v1594_v45 = vld [vmem:[%s6154_s6 + $0x38] sm:$0xff]  ;;  %v4058_v49 = vpack.c.bf16 %v1596_v48, %v1595_v47 }
 0x18a   : > { %4015 = vmatprep.subr.bf16.mxu1 %v4524_v53  ;;  %v4055_v46 = vpack.c.bf16 %v1594_v45, %v1593_v44  ;;  %v1705_v44 = vld [vmem:[%s6155_s7 + $0x70] sm:$0xff] }
 0x18b   : > { %v3459_v45 = vld [vmem:[%s6155_s7 + $0xf0] sm:$0xff]  ;;  %v4109_v47 = vpack.c.bf16 %v1705_v44, %v1703_v42 }
 0x18c   : > { %3445 = vmatmul.mubr.msk.f32.vlgmr.msra.gmra.mrb[4].mxu1 %vm1304_vm4, %v1395_v51  ;;  %v1598_v51 = vld [vmem:[%s6154_s6 + $0x58] sm:$0xff] }
 0x18d   : > { %1473 = vmatprep.mubr.f32.mxu1 %v4522_v7  ;;  %4017 = vmatpush1.bf16.msra.mxu1 %v4016_v52  ;;  %v4061_v52 = vpack.c.bf16 %v1598_v51, %v1597_v50  ;;  %v1710_v50 = vld [vmem:[%s6155_s7 + $0x98] sm:$0xff] }
 0x18e   : > { %4018 = vmatprep.subr.bf16.mxu1 %v4524_v53 }
 0x190   : > { %3446 = vmatmul.mubr.msk.f32.gmra.mrb[6].mxu1 %vm1304_vm4, %v1396_v56  ;;  %v4064_v56 = vpack.c.bf16 %v1600_v55, %v1599_v54  ;;  %v3466_v54 = vld [vmem:[%s6155_s7 + $0x128] sm:$0xff]  ;;  %v1707_v55 = vld [vmem:[%s6155_s7 + $0x80] sm:$0xff] }
 0x191   : > { %4020 = vmatpush1.bf16.msra.mxu1 %v4019_v57  ;;  %v1601_v57 = vld [vmem:[%s6154_s6 + $0x70] sm:$0xff] }
 0x192   : > { %4021 = vmatprep.subr.bf16.mxu1 %v4524_v53  ;;  %v4067_v59 = vpack.c.bf16 %v1602_v58, %v1601_v57  ;;  %v1709_v57 = vld [vmem:[%s6155_s7 + $0x90] sm:$0xff] }
 0x193   : > { %v3463_v58 = vld [vmem:[%s6155_s7 + $0x110] sm:$0xff] }
 0x195   : > { %4023 = vmatpush1.bf16.msra.mxu1 %v4022_v60  ;;  %v1603_v60 = vld [vmem:[%s6154_s6 + $0x80] sm:$0xff] }
 0x196   : > { %4024 = vmatprep.subr.bf16.mxu1 %v4524_v53  ;;  %v4070_v62 = vpack.c.bf16 %v1604_v61, %v1603_v60  ;;  %v4113_v60 = vpack.c.bf16 %v1709_v57, %v1707_v55  ;;  %v3499_v55 = vld [vmem:[%s6155_s7 + $0x1f0] sm:$0xff]  ;;  %v3502_v57 = vld [vmem:[%s6155_s7 + $0x208] sm:$0xf] }
 0x199   : > { %4026 = vmatpush1.bf16.msra.mxu1 %v4025_v63  ;;  %v1605_v63 = vld [vmem:[%s6154_s6 + $0x90] sm:$0xff] }
 0x19a   : > { %4027 = vmatprep.subr.bf16.mxu1 %v4524_v53  ;;  %v4073_v1 = vpack.c.bf16 %v1606_v0, %v1605_v63  ;;  %v3470_v63 = vld [vmem:[%s6155_s7 + $0x148] sm:$0xff] }
 0x19b   : > { %v1712_v0 = vld [vmem:[%s6155_s7 + $0xa8] sm:$0xf] }
 0x19d   : > { %4029 = vmatpush1.bf16.msra.mxu1 %v4028_v2  ;;  %v1607_v2 = vld [vmem:[%s6154_s6 + $0xa0] sm:$0xff] }
 0x19e   : > { %4030 = vmatprep.subr.bf16.mxu1 %v4524_v53 }
 0x1a1   : > { %4032 = vmatpush1.bf16.msra.mxu1 %v4031_v5  ;;  %v1691_v5 = vld [vmem:[%s6155_s7] sm:$0xff] }
 0x1a2   : > { %4033 = vmatprep.subr.bf16.mxu1 %v4524_v53  ;;  %v4097_v11 = vpack.c.bf16 %v1693_v8, %v1691_v5  ;;  %v3482_v5 = vld [vmem:[%s6155_s7 + $0x168] sm:$0xff]  ;;  %v4093_v8 = vpack.c.bf16 %v3469_v4, %v3467_v3  ;;  %v3511_v4 = vld [vmem:[%s6155_s7 + $0x230] sm:$0xff] }
 0x1a5   : > { %4035 = vmatpush1.bf16.msra.mxu1 %v4034_v9  ;;  %v1696_v9 = vld [vmem:[%s6155_s7 + $0x28] sm:$0xff] }
 0x1a6   : > { %4036 = vmatprep.subr.bf16.mxu1 %v4524_v53 }
 0x1a9   : > { %4038 = vmatpush1.bf16.msra.mxu1 %v4037_v12  ;;  %v4099_v12 = vpack.c.bf16 %v1698_v10, %v1696_v9  ;;  %v3472_v10 = vld [vmem:[%s6155_s7 + $0x158] sm:$0xf] }
 0x1aa   : > { %4039 = vmatprep.subr.bf16.mxu1 %v4524_v53 }
 0x1ad   : > { %4041 = vmatpush1.bf16.msra.mxu1 %v4040_v18  ;;  %v1695_v18 = vld [vmem:[%s6155_s7 + $0x20] sm:$0xff] }
 0x1ae   : > { %4042 = vmatprep.subr.bf16.mxu1 %v4524_v53 }
 0x1b1   : > { %4044 = vmatpush1.bf16.msra.mxu1 %v4043_v21  ;;  %v3451_v21 = vld [vmem:[%s6155_s7 + $0xb0] sm:$0xff] }
 0x1b2   : > { %1552 = vmatprep.subr.mxu1 %v4522_v7 }
 0x1b5   : > { %1553 = vmatpush1.msra.mxu1 %v1504_v22  ;;  %v3453_v22 = vld [vmem:[%s6155_s7 + $0xc0] sm:$0xff] }
 0x1b6   : > { %4045 = vmatprep.subr.bf16.mxu1 %v4524_v53 }
 0x257   : > { %v1384_v23 = vpop.f32.mrb[0].mxu1 }
 0x258   : > { %v1386_v24 = vpop.f32.mrb[1].mxu1 }
 0x25b   : > { %v1390_v25 = vpop.f32.mrb[2].mxu1 }
 0x25c   : > { %v1392_v26 = vpop.f32.mrb[3].mxu1 }
 0x25f   : > { %v1469_v29 = vpop.f32.mrb[4].mxu1 }
 0x260   : > { %v1480_v30 = vmax.f32 %v1384_v23, %v1469_v29  ;;  %v1471_v31 = vpop.f32.mrb[5].mxu1  ;;  %v4101_v23 = vpack.c.bf16 %v1697_v20, %v1695_v18  ;;  %v3458_v29 = vld [vmem:[%s6155_s7 + $0xe8] sm:$0xff] }
 0x261   : > { %v1481_v32 = vmax.f32 %v1386_v24, %v1471_v31  ;;  %v4077_v24 = vpack.c.bf16 %v3453_v22, %v3451_v21  ;;  %v1701_v31 = vld [vmem:[%s6155_s7 + $0x50] sm:$0xff] }
 0x263   : > { %v1475_v36 = vpop.f32.mrb[6].mxu1  ;;  %3447 = vmatprep.mubr.msk.f32.mxu1 %vm1505_vm5, %v1481_v32  ;;  %4078 = vmatpush1.bf16.msra.mxu0 %v4077_v24 }
 0x264   : > { %v1482_v37 = vmax.f32 %v1390_v25, %v1475_v36  ;;  %v1477_v38 = vpop.f32.mrb[7].mxu1  ;;  %1577 = vmatmul.mubr.f32.vlgmr.msra.gmra.mrb[8].mxu1 %v1480_v30  ;;  %v1700_v25 = vld [vmem:[%s6155_s7 + $0x48] sm:$0xff] }
 0x265   : > { %v1483_v39 = vmax.f32 %v1392_v26, %v1477_v38  ;;  %4047 = vmatpush1.bf16.msra.mxu1 %v4046_v33  ;;  %v1702_v26 = vld [vmem:[%s6155_s7 + $0x58] sm:$0xff]  ;;  %v3455_v33 = vld [vmem:[%s6155_s7 + $0xd0] sm:$0xff] }
 0x266   : > { %4048 = vmatprep.subr.bf16.mxu1 %v4524_v53  ;;  %v4103_v28 = vpack.c.bf16 %v1702_v26, %v1700_v25  ;;  %v4081_v35 = vpack.c.bf16 %v3457_v34, %v3455_v33  ;;  %v1706_v38 = vld [vmem:[%s6155_s7 + $0x78] sm:$0xff]  ;;  %v3481_v25 = vld [vmem:[%s6155_s7 + $0x160] sm:$0xff]  ;;  %v3483_v26 = vld [vmem:[%s6155_s7 + $0x170] sm:$0xff] }
 0x267   : > { %3448 = vmatprep.mubr.msk.f32.mxu1 %vm1505_vm5, %v1483_v39  ;;  %v3490_v34 = vld [vmem:[%s6155_s7 + $0x1a8] sm:$0xff] }
 0x268   : > { %1582 = vmatmul.mubr.f32.gmra.mrb[10].mxu1 %v1482_v37 }
 0x269   : > { %4050 = vmatpush1.bf16.msra.mxu1 %v4049_v40  ;;  %3449 = vmatprep.mubr.msk.f32.mxu1 %vm1505_vm5, %v1481_v32  ;;  %v4079_v32 = vpack.c.bf16 %v3458_v29, %v3456_v27  ;;  %v3460_v40 = vld [vmem:[%s6155_s7 + $0xf8] sm:$0xff]  ;;  %v3486_v27 = vld [vmem:[%s6155_s7 + $0x188] sm:$0xff]  ;;  %v4117_v29 = vpack.c.bf16 %v3483_v26, %v3481_v25 }
 0x26a   : > { %4051 = vmatprep.subr.bf16.mxu1 %v4524_v53  ;;  %v3526_v25 = vld [vmem:[%s6155_s7 + $0x2a8] sm:$0xff] }
 0x26b   : > { %4080 = vmatprep.subr.bf16.mxu0 %v4079_v32  ;;  %v3487_v32 = vld [vmem:[%s6155_s7 + $0x190] sm:$0xff] }
 0x26c   : > { %4082 = vmatpush1.bf16.msra.mxu0 %v4081_v35  ;;  %v3492_v35 = vld [vmem:[%s6155_s7 + $0x1b8] sm:$0xff] }
 0x26d   : > { %4053 = vmatpush1.bf16.msra.mxu1 %v4052_v43  ;;  %v4083_v43 = vpack.c.bf16 %v3462_v41, %v3460_v40  ;;  %v3494_v40 = vld [vmem:[%s6155_s7 + $0x1c8] sm:$0xff] }
 0x26e   : > { %4054 = vmatprep.subr.bf16.mxu1 %v4524_v53 }
 0x26f   : > { %4084 = vmatprep.subr.bf16.mxu0 %v4083_v43  ;;  %v3496_v43 = vld [vmem:[%s6155_s7 + $0x1d8] sm:$0xff] }
 0x271   : > { %4056 = vmatpush1.bf16.msra.mxu1 %v4055_v46  ;;  %v3461_v46 = vld [vmem:[%s6155_s7 + $0x100] sm:$0xff] }
 0x272   : > { %4057 = vmatprep.subr.bf16.mxu1 %v4524_v53  ;;  %v4085_v48 = vpack.c.bf16 %v3461_v46, %v3459_v45  ;;  %v4127_v45 = vpack.c.bf16 %v3496_v43, %v3494_v40  ;;  %v3493_v46 = vld [vmem:[%s6155_s7 + $0x1c0] sm:$0xff]  ;;  %v3539_v43 = vld [vmem:[%s6155_s7 + $0x2f0] sm:$0xff] }
 0x274   : > { %4086 = vmatpush1.bf16.msra.mxu0 %v4085_v48 }
 0x275   : > { %4059 = vmatpush1.bf16.msra.mxu1 %v4058_v49  ;;  %v1708_v49 = vld [vmem:[%s6155_s7 + $0x88] sm:$0xff] }
 0x276   : > { %4060 = vmatprep.subr.bf16.mxu1 %v4524_v53  ;;  %v4111_v51 = vpack.c.bf16 %v1710_v50, %v1708_v49  ;;  %v3498_v49 = vld [vmem:[%s6155_s7 + $0x1e8] sm:$0xff]  ;;  %v3500_v50 = vld [vmem:[%s6155_s7 + $0x1f8] sm:$0xff] }
 0x279   : > { %4062 = vmatpush1.bf16.msra.mxu1 %v4061_v52  ;;  %v3464_v52 = vld [vmem:[%s6155_s7 + $0x118] sm:$0xff] }
 0x27a   : > { %4063 = vmatprep.subr.bf16.mxu1 %v4524_v53 }
 0x27d   : > { %4065 = vmatpush1.bf16.msra.mxu1 %v4064_v56  ;;  %v4087_v56 = vpack.c.bf16 %v3466_v54, %v3464_v52  ;;  %v4131_v52 = vpack.c.bf16 %v3500_v50, %v3498_v49  ;;  %v3497_v54 = vld [vmem:[%s6155_s7 + $0x1e0] sm:$0xff]  ;;  %v3543_v50 = vld [vmem:[%s6155_s7 + $0x310] sm:$0xff] }
 0x27e   : > { %4066 = vmatprep.subr.bf16.mxu1 %v4524_v53  ;;  %v3541_v49 = vld [vmem:[%s6155_s7 + $0x300] sm:$0xff] }
 0x27f   : > { %4088 = vmatprep.subr.bf16.mxu0 %v4087_v56  ;;  %v4133_v56 = vpack.c.bf16 %v3499_v55, %v3497_v54  ;;  %v3548_v54 = vld [vmem:[%s6155_s7 + $0x338] sm:$0xff]  ;;  %v4165_v55 = vpack.c.bf16 %v3543_v50, %v3541_v49  ;;  %v2460_v49 = vld [vmem:[%s6159_s11 + $0x50] sm:$0xff] }
 0x280   : > { %v2461_v50 = vld [vmem:[%s6159_s11 + $0x58] sm:$0xff] }
 0x281   : > { %4068 = vmatpush1.bf16.msra.mxu1 %v4067_v59  ;;  %v3465_v59 = vld [vmem:[%s6155_s7 + $0x120] sm:$0xff] }
 0x282   : > { %4069 = vmatprep.subr.bf16.mxu1 %v4524_v53  ;;  %v4089_v61 = vpack.c.bf16 %v3465_v59, %v3463_v58  ;;  %v3508_v58 = vld [vmem:[%s6155_s7 + $0x218] sm:$0xff]  ;;  %v3510_v59 = vld [vmem:[%s6155_s7 + $0x228] sm:$0xff] }
 0x284   : > { %4090 = vmatpush1.bf16.msra.mxu0 %v4089_v61  ;;  %v3509_v61 = vld [vmem:[%s6155_s7 + $0x220] sm:$0xff] }
 0x285   : > { %4071 = vmatpush1.bf16.msra.mxu1 %v4070_v62  ;;  %v3468_v62 = vld [vmem:[%s6155_s7 + $0x138] sm:$0xff] }
 0x286   : > { %4072 = vmatprep.subr.bf16.mxu1 %v4524_v53 }
 0x289   : > { %4074 = vmatpush1.bf16.msra.mxu1 %v4073_v1  ;;  %v4091_v1 = vpack.c.bf16 %v3470_v63, %v3468_v62  ;;  %v3512_v62 = vld [vmem:[%s6155_s7 + $0x238] sm:$0xff]  ;;  %v3514_v63 = vld [vmem:[%s6155_s7 + $0x248] sm:$0xff] }
 0x28a   : > { %1648 = vmatprep.subr.mxu1 %v4522_v7  ;;  %v4139_v3 = vpack.c.bf16 %v3514_v63, %v3512_v62  ;;  %v3549_v63 = vld [vmem:[%s6155_s7 + $0x340] sm:$0xff] }
 0x28b   : > { %4092 = vmatprep.subr.bf16.mxu0 %v4091_v1  ;;  %v4135_v1 = vpack.c.bf16 %v3510_v59, %v3508_v58  ;;  %v3547_v58 = vld [vmem:[%s6155_s7 + $0x330] sm:$0xff]  ;;  %v3550_v59 = vld [vmem:[%s6155_s7 + $0x348] sm:$0xff] }
 0x28c   : > { %4094 = vmatpush1.bf16.msra.mxu0 %v4093_v8  ;;  %v3516_v8 = vld [vmem:[%s6155_s7 + $0x258] sm:$0xff] }
 0x28d   : > { %1649 = vmatpush1.msra.mxu1 %v1607_v2  ;;  %v1711_v2 = vld [vmem:[%s6155_s7 + $0xa0] sm:$0xf]  ;;  %3473 = vmatprep.subr.msk.mxu0 %vm1311_vm1, %v3472_v10 }
 0x28e   : > { %1673 = vmatmul.mubr.f32.vlgmr.msra.gmra.mrb[12].mxu1 %v1480_v30  ;;  %4096 = vmatprep.subr.bf16.mxu1 %v4095_v6  ;;  %v1699_v30 = vld [vmem:[%s6155_s7 + $0x40] sm:$0xff]  ;;  %v3484_v6 = vld [vmem:[%s6155_s7 + $0x178] sm:$0xff] }
 0x28f   : > { %3450 = vmatprep.mubr.msk.f32.mxu1 %vm1505_vm5, %v1483_v39  ;;  %4098 = vmatpush1.bf16.msra.mxu1 %v4097_v11  ;;  %v4105_v36 = vpack.c.bf16 %v1701_v31, %v1699_v30  ;;  %v4115_v9 = vpack.c.bf16 %v3484_v6, %v3482_v5  ;;  %v3471_v11 = vld [vmem:[%s6155_s7 + $0x150] sm:$0xf]  ;;  %v3485_v31 = vld [vmem:[%s6155_s7 + $0x180] sm:$0xff] }
 0x290   : > { %4100 = vmatprep.subr.bf16.mxu1 %v4099_v12  ;;  %3474 = vmatpush1.msk.msra.mxu0 %vm1311_vm1, %v3471_v11  ;;  %v3513_v5 = vld [vmem:[%s6155_s7 + $0x240] sm:$0xff] }
 0x291   : > { %v4141_v10 = vpack.c.bf16 %v3513_v5, %v3511_v4 }
 0x292   : > { %1678 = vmatmul.mubr.f32.gmra.mrb[14].mxu1 %v1482_v37  ;;  %v1704_v37 = vld [vmem:[%s6155_s7 + $0x68] sm:$0xff] }
 0x293   : > { %1903 = vmatprep.mubr.f32.mxu1 %v4522_v7  ;;  %4102 = vmatpush1.bf16.msra.mxu1 %v4101_v23  ;;  %v4107_v39 = vpack.c.bf16 %v1706_v38, %v1704_v37  ;;  %v4123_v37 = vpack.c.bf16 %v3492_v35, %v3490_v34  ;;  %v3489_v38 = vld [vmem:[%s6155_s7 + $0x1a0] sm:$0xff]  ;;  %v3535_v35 = vld [vmem:[%s6155_s7 + $0x2d0] sm:$0xff] }
 0x294   : > { %4104 = vmatprep.subr.bf16.mxu1 %v4103_v28  ;;  %v3488_v28 = vld [vmem:[%s6155_s7 + $0x198] sm:$0xff]  ;;  %v3533_v34 = vld [vmem:[%s6155_s7 + $0x2c0] sm:$0xff] }
 0x295   : > { %v4119_v30 = vpack.c.bf16 %v3488_v28, %v3486_v27  ;;  %v3523_v28 = vld [vmem:[%s6155_s7 + $0x290] sm:$0xff]  ;;  %v4157_v40 = vpack.c.bf16 %v3535_v35, %v3533_v34  ;;  %v2451_v34 = vld [vmem:[%s6159_s11 + $0x8] sm:$0xff]  ;;  %v2373_v35 = vld [vmem:[%s6158_s10] sm:$0x1f] }
 0x297   : > { %4106 = vmatpush1.bf16.msra.mxu1 %v4105_v36  ;;  %v4121_v36 = vpack.c.bf16 %v3487_v32, %v3485_v31  ;;  %v3528_v31 = vld [vmem:[%s6155_s7 + $0x2b8] sm:$0xf]  ;;  %v3534_v32 = vld [vmem:[%s6155_s7 + $0x2c8] sm:$0xff] }
 0x298   : > { %4108 = vmatprep.subr.bf16.mxu1 %v4107_v39  ;;  %v3491_v39 = vld [vmem:[%s6155_s7 + $0x1b0] sm:$0xff] }
 0x299   : > { %v4125_v44 = vpack.c.bf16 %v3491_v39, %v3489_v38  ;;  %v3527_v38 = vld [vmem:[%s6155_s7 + $0x2b0] sm:$0xf] }
 0x29b   : > { %4110 = vmatpush1.bf16.msra.mxu1 %v4109_v47  ;;  %v3495_v47 = vld [vmem:[%s6155_s7 + $0x1d0] sm:$0xff] }
 0x29c   : > { %4112 = vmatprep.subr.bf16.mxu1 %v4111_v51  ;;  %v4129_v51 = vpack.c.bf16 %v3495_v47, %v3493_v46  ;;  %v3544_v46 = vld [vmem:[%s6155_s7 + $0x318] sm:$0xff] }
 0x29f   : > { %4114 = vmatpush1.bf16.msra.mxu1 %v4113_v60  ;;  %v3507_v60 = vld [vmem:[%s6155_s7 + $0x210] sm:$0xff] }
 0x2a0   : > { %3477 = vmatprep.subr.msk.mxu1 %vm1311_vm1, %v1712_v0  ;;  %v3501_v0 = vld [vmem:[%s6155_s7 + $0x200] sm:$0xf] }
 0x2a3   : > { %3478 = vmatpush1.msk.msra.mxu1 %vm1311_vm1, %v1711_v2  ;;  %v4137_v2 = vpack.c.bf16 %v3509_v61, %v3507_v60  ;;  %v3552_v60 = vld [vmem:[%s6155_s7 + $0x358] sm:$0xff] }
 0x2a4   : > { %4116 = vmatprep.subr.bf16.mxu1 %v4115_v9  ;;  %v3518_v9 = vld [vmem:[%s6155_s7 + $0x268] sm:$0xff]  ;;  %v4171_v62 = vpack.c.bf16 %v3552_v60, %v3550_v59  ;;  %v2466_v59 = vld [vmem:[%s6159_s11 + $0x80] sm:$0xff] }
 0x2a5   : > { %v4143_v11 = vpack.c.bf16 %v3518_v9, %v3516_v8  ;;  %v2467_v60 = vld [vmem:[%s6159_s11 + $0x88] sm:$0xff] }
 0x337   : > { %v1578_v12 = vpop.f32.mrb[8].mxu1 }
 0x338   : > { %v1580_v15 = vpop.f32.mrb[9].mxu1 }
 0x339   : > { %v3517_v15 = vld [vmem:[%s6155_s7 + $0x260] sm:$0xff] }
 0x33b   : > { %v1583_v17 = vpop.f32.mrb[10].mxu1 }
 0x33c   : > { %v1585_v18 = vpop.f32.mrb[11].mxu1 }
 0x33d   : > { %v3520_v18 = vld [vmem:[%s6155_s7 + $0x278] sm:$0xff] }
 0x361   : > { %v1674_v19 = vpop.f32.mrb[12].mxu1 }
 0x362   : > { %v1683_v20 = vmax.f32 %v1578_v12, %v1674_v19  ;;  %v1676_v21 = vpop.f32.mrb[13].mxu1  ;;  %v3515_v12 = vld [vmem:[%s6155_s7 + $0x250] sm:$0xff]  ;;  %v3522_v19 = vld [vmem:[%s6155_s7 + $0x288] sm:$0xff] }
 0x363   : > { %v4147_v21 = vpack.c.bf16 %v3522_v19, %v3520_v18 }
 0x364   : > { %1686 = vst.msk [vmem:[#allocation2] sm:$0xff] %vm1685_vm6, %v1683_v20  ;;  %v4145_v20 = vpack.c.bf16 %v3517_v15, %v3515_v12 }
 0x365   : > { %v1679_v22 = vpop.f32.mrb[14].mxu1 }
 0x366   : > { %v1684_v23 = vmax.f32 %v1583_v17, %v1679_v22  ;;  %v1681_v24 = vpop.f32.mrb[15].mxu1  ;;  %v3519_v22 = vld [vmem:[%s6155_s7 + $0x270] sm:$0xff] }
 0x367   : > { %v3524_v24 = vld [vmem:[%s6155_s7 + $0x298] sm:$0xff] }
 0x368   : > { %1688 = vst.msk [vmem:[#allocation2 + $0x8] sm:$0x3f] %vm1687_vm7, %v1684_v23  ;;  %v3521_v23 = vld [vmem:[%s6155_s7 + $0x280] sm:$0xff]  ;;  %v4151_v27 = vpack.c.bf16 %v3526_v25, %v3524_v24 }
 0x369   : > { %v4149_v26 = vpack.c.bf16 %v3521_v23, %v3519_v22 }
 0x36b   : > { %v1689_v33 = vld [vmem:[#allocation2] sm:$0xff] }
 0x36c   : > { %3479 = vmatmul.mubr.msk.f32.vlgmr.msra.gmra.mrb[16].mxu1 %vm1685_vm6, %v1689_v33  ;;  %v3536_v33 = vld [vmem:[%s6155_s7 + $0x2d8] sm:$0xff] }
 0x36d   : > { %4118 = vmatpush1.bf16.msra.mxu1 %v4117_v29  ;;  %1909 = vmatprep.mubr.f32.mxu1 %v4522_v7  ;;  %v3525_v29 = vld [vmem:[%s6155_s7 + $0x2a0] sm:$0xff]  ;;  %v4155_v39 = vpack.c.bf16 %v3536_v33, %v3534_v32 }
 0x36e   : > { %4120 = vmatprep.subr.bf16.mxu1 %v4119_v30  ;;  %v4153_v30 = vpack.c.bf16 %v3525_v29, %v3523_v28 }
 0x36f   : > { %v1713_v41 = vld [vmem:[#allocation2 + $0x1] sm:$0xff]  ;;  %v1714_v48 = vld [vmem:[#allocation2 + $0x9] sm:$0x3]  ;;  %v2153_v5 = vld [vmem:[#allocation2 + $0xc] sm:$0x3] }
 0x370   : > { %v1690_v42 = vld [vmem:[#allocation2 + $0x8] sm:$0x3]  ;;  %3475 = vmatmul.mubr.msk.f32.vlgmr.msra.gmra.mrb[8].mxu0 %vm1685_vm6, %v1713_v41  ;;  %v1917_v17 = vld [vmem:[#allocation2 + $0xa] sm:$0x3] }
 0x371   : > { %3480 = vmatmul.mubr.msk.f32.gmra.mrb[18].mxu1 %vm1685_vm6, %v1690_v42  ;;  %1820 = vmatprep.mubr.f32.mxu0 %v4522_v7  ;;  %v1916_v6 = vld [vmem:[#allocation2 + $0x2] sm:$0xff] }
 0x372   : > { %4122 = vmatpush1.bf16.msra.mxu1 %v4121_v36  ;;  %2017 = vmatprep.mubr.f32.mxu1 %v4522_v7  ;;  %v3538_v36 = vld [vmem:[%s6155_s7 + $0x2e8] sm:$0xff]  ;;  %v3537_v42 = vld [vmem:[%s6155_s7 + $0x2e0] sm:$0xff] }
 0x373   : > { %4124 = vmatprep.subr.bf16.mxu1 %v4123_v37  ;;  %v3540_v37 = vld [vmem:[%s6155_s7 + $0x2f8] sm:$0xff]  ;;  %v4161_v47 = vpack.c.bf16 %v3539_v43, %v3537_v42  ;;  %v2152_v4 = vld [vmem:[#allocation2 + $0x4] sm:$0xff]  ;;  %v2456_v43 = vld [vmem:[%s6159_s11 + $0x30] sm:$0xff] }
 0x374   : > { %3476 = vmatmul.mubr.msk.f32.gmra.mrb[10].mxu0 %vm1685_vm6, %v1714_v48  ;;  %v4159_v41 = vpack.c.bf16 %v3540_v37, %v3538_v36  ;;  %v2452_v37 = vld [vmem:[%s6159_s11 + $0x10] sm:$0xff] }
 0x375   : > { %2366 = vmatprep.mubr.f32.mxu0 %v4522_v7 }
 0x376   : > { %4126 = vmatpush1.bf16.msra.mxu1 %v4125_v44  ;;  %v2034_v44 = vld [vmem:[#allocation2 + $0x3] sm:$0xff] }
 0x377   : > { %4128 = vmatprep.subr.bf16.mxu1 %v4127_v45  ;;  %v3542_v45 = vld [vmem:[%s6155_s7 + $0x308] sm:$0xff] }
 0x378   : > { %v4163_v48 = vpack.c.bf16 %v3544_v46, %v3542_v45  ;;  %v2458_v46 = vld [vmem:[%s6159_s11 + $0x40] sm:$0xff] }
 0x37a   : > { %4130 = vmatpush1.bf16.msra.mxu1 %v4129_v51  ;;  %v2035_v51 = vld [vmem:[#allocation2 + $0xb] sm:$0x3] }
 0x37b   : > { %4132 = vmatprep.subr.bf16.mxu1 %v4131_v52  ;;  %v3546_v52 = vld [vmem:[%s6155_s7 + $0x328] sm:$0xff] }
 0x37e   : > { %4134 = vmatpush1.bf16.msra.mxu1 %v4133_v56  ;;  %v4167_v56 = vpack.c.bf16 %v3548_v54, %v3546_v52  ;;  %v2462_v52 = vld [vmem:[%s6159_s11 + $0x60] sm:$0xff]  ;;  %v2463_v54 = vld [vmem:[%s6159_s11 + $0x68] sm:$0xff] }
 0x37f   : > { %3503 = vmatprep.subr.msk.mxu1 %vm1311_vm1, %v3502_v57  ;;  %v3545_v57 = vld [vmem:[%s6155_s7 + $0x320] sm:$0xff] }
 0x380   : > { %v4169_v61 = vpack.c.bf16 %v3547_v58, %v3545_v57  ;;  %v2465_v57 = vld [vmem:[%s6159_s11 + $0x78] sm:$0xff] }
 0x382   : > { %3504 = vmatpush1.msk.msra.mxu1 %vm1311_vm1, %v3501_v0  ;;  %v3551_v0 = vld [vmem:[%s6155_s7 + $0x350] sm:$0xff] }
 0x383   : > { %3505 = vmatmul.mubr.msk.f32.vlgmr.msra.gmra.mrb[16].mxu1 %vm1685_vm6, %v1916_v6  ;;  %4136 = vmatprep.subr.bf16.mxu1 %v4135_v1  ;;  %v4173_v1 = vpack.c.bf16 %v3551_v0, %v3549_v63  ;;  %v2469_v63 = vld [vmem:[%s6159_s11 + $0x98] sm:$0xff] }
 0x384   : > { %4138 = vmatpush1.bf16.msra.mxu1 %v4137_v2  ;;  %2023 = vmatprep.mubr.f32.mxu1 %v4522_v7  ;;  %v3554_v2 = vld [vmem:[%s6155_s7 + $0x368] sm:$0xf] }
 0x385   : > { %4140 = vmatprep.subr.bf16.mxu1 %v4139_v3  ;;  %v3553_v3 = vld [vmem:[%s6155_s7 + $0x360] sm:$0xf] }
 0x387   : > { %3506 = vmatmul.mubr.msk.f32.gmra.mrb[18].mxu1 %vm1685_vm6, %v1917_v17 }
 0x388   : > { %4142 = vmatpush1.bf16.msra.mxu1 %v4141_v10  ;;  %2135 = vmatprep.mubr.f32.mxu1 %v4522_v7 }
 0x389   : > { %4144 = vmatprep.subr.bf16.mxu1 %v4143_v11  ;;  %v2270_v11 = vld [vmem:[%s6156_s8] sm:$0x3] }
 0x38a   : > { %v2275_v17 = vrot.slane %v2270_v11, %v1278_v14 }
 0x38c   : > { %4146 = vmatpush1.bf16.msra.mxu1 %v4145_v20  ;;  %v2279_v20 = vrot.slane %v2270_v11, %v1282_v16  ;;  %v2450_v16 = vld [vmem:[%s6159_s11] sm:$0xff]  ;;  %v2546_v11 = vld [vmem:[%s6160_s12 + $0x10] sm:$0xff] }
 0x38d   : > { %4148 = vmatprep.subr.bf16.mxu1 %v4147_v21  ;;  %v4188_v36 = vpack.c.bf16 %v2451_v34, %v2450_v16  ;;  %v2561_v16 = vld [vmem:[%s6160_s12 + $0x88] sm:$0xff] }
 0x390   : > { %4150 = vmatpush1.bf16.msra.mxu1 %v4149_v26 }
 0x391   : > { %4152 = vmatprep.subr.bf16.mxu1 %v4151_v27 }
 0x394   : > { %4154 = vmatpush1.bf16.msra.mxu1 %v4153_v30 }
 0x395   : > { %3529 = vmatprep.subr.msk.mxu1 %vm1311_vm1, %v3528_v31 }
 0x398   : > { %3530 = vmatpush1.msk.msra.mxu1 %vm1311_vm1, %v3527_v38  ;;  %v2453_v38 = vld [vmem:[%s6159_s11 + $0x18] sm:$0xff] }
 0x399   : > { %3531 = vmatmul.mubr.msk.f32.vlgmr.msra.gmra.mrb[16].mxu1 %vm1685_vm6, %v2034_v44  ;;  %4156 = vmatprep.subr.bf16.mxu1 %v4155_v39  ;;  %v4191_v39 = vpack.c.bf16 %v2453_v38, %v2452_v37  ;;  %v2457_v44 = vld [vmem:[%s6159_s11 + $0x38] sm:$0xff]  ;;  %v2639_v38 = vld [vmem:[%s6161_s13] sm:$0xff] }
 0x39a   : > { %4158 = vmatpush1.bf16.msra.mxu1 %v4157_v40  ;;  %2141 = vmatprep.mubr.f32.mxu1 %v4522_v7  ;;  %v2454_v40 = vld [vmem:[%s6159_s11 + $0x20] sm:$0xff]  ;;  %v4197_v45 = vpack.c.bf16 %v2457_v44, %v2456_v43 }
 0x39b   : > { %4160 = vmatprep.subr.bf16.mxu1 %v4159_v41  ;;  %v2455_v41 = vld [vmem:[%s6159_s11 + $0x28] sm:$0xff]  ;;  %v2643_v44 = vld [vmem:[%s6161_s13 + $0x20] sm:$0xff] }
 0x39c   : > { %v4194_v42 = vpack.c.bf16 %v2455_v41, %v2454_v40  ;;  %v2641_v40 = vld [vmem:[%s6161_s13 + $0x10] sm:$0xff] }
 0x39d   : > { %3532 = vmatmul.mubr.msk.f32.gmra.mrb[18].mxu1 %vm1685_vm6, %v2035_v51  ;;  %v4203_v51 = vpack.c.bf16 %v2461_v50, %v2460_v49  ;;  %v2647_v50 = vld [vmem:[%s6161_s13 + $0x40] sm:$0xff] }
 0x39e   : > { %4162 = vmatpush1.bf16.msra.mxu1 %v4161_v47  ;;  %2253 = vmatprep.mubr.f32.mxu1 %v4522_v7  ;;  %v2459_v47 = vld [vmem:[%s6159_s11 + $0x48] sm:$0xff] }
 0x39f   : > { %4164 = vmatprep.subr.bf16.mxu1 %v4163_v48  ;;  %v4200_v48 = vpack.c.bf16 %v2459_v47, %v2458_v46  ;;  %v2645_v47 = vld [vmem:[%s6161_s13 + $0x30] sm:$0xff] }
 0x3a2   : > { %4166 = vmatpush1.bf16.msra.mxu1 %v4165_v55  ;;  %v4206_v55 = vpack.c.bf16 %v2463_v54, %v2462_v52 }
 0x3a3   : > { %4168 = vmatprep.subr.bf16.mxu1 %v4167_v56  ;;  %v2464_v56 = vld [vmem:[%s6159_s11 + $0x70] sm:$0xff] }
 0x3a4   : > { %v4209_v58 = vpack.c.bf16 %v2465_v57, %v2464_v56  ;;  %v3069_v56 = vld [vmem:[%s6163_s15] sm:$0xff]  ;;  %v3070_v57 = vld [vmem:[%s6163_s15 + $0x8] sm:$0xff] }
 0x3a6   : > { %4170 = vmatpush1.bf16.msra.mxu1 %v4169_v61  ;;  %v4212_v61 = vpack.c.bf16 %v2467_v60, %v2466_v59  ;;  %v4323_v59 = vpack.c.bf16 %v3070_v57, %v3069_v56  ;;  %v3072_v60 = vld [vmem:[%s6163_s15 + $0x18] sm:$0xff]  ;;  %v3596_v57 = vld [vmem:[%s6161_s13 + $0x120] sm:$0xff] }
 0x3a7   : > { %4172 = vmatprep.subr.bf16.mxu1 %v4171_v62  ;;  %v2468_v62 = vld [vmem:[%s6159_s11 + $0x90] sm:$0xff] }
 0x3a8   : > { %v4215_v0 = vpack.c.bf16 %v2469_v63, %v2468_v62  ;;  %v3073_v62 = vld [vmem:[%s6163_s15 + $0x20] sm:$0xff]  ;;  %v3074_v63 = vld [vmem:[%s6163_s15 + $0x28] sm:$0xff] }
 0x3aa   : > { %4174 = vmatpush1.bf16.msra.mxu1 %v4173_v1 }
 0x3ab   : > { %3555 = vmatprep.subr.msk.mxu1 %vm1311_vm1, %v3554_v2 }
 0x3ae   : > { %3556 = vmatpush1.msk.msra.mxu1 %vm1311_vm1, %v3553_v3  ;;  %v2544_v3 = vld [vmem:[%s6160_s12] sm:$0xff] }
 0x3af   : > { %3557 = vmatmul.mubr.msk.f32.vlgmr.msra.gmra.mrb[16].mxu1 %vm1685_vm6, %v2152_v4  ;;  %4247 = vmatprep.subr.bf16.mxu1 %v4524_v53  ;;  %v2545_v4 = vld [vmem:[%s6160_s12 + $0x8] sm:$0xff] }
 0x3b0   : > { %2259 = vmatprep.mubr.f32.mxu1 %v4522_v7 }
 0x3b3   : > { %3558 = vmatmul.mubr.msk.f32.gmra.mrb[18].mxu1 %vm1685_vm6, %v2153_v5 }
 0x3b4   : > { %3722 = vmatprep.mubr.msk.f32.mxu1 %vm4525_vm12, %v4522_v7 }
 0x443   : > { %v1816_v6 = vpop.f32.mrb[8].mxu0 }
 0x444   : > { %v1818_v8 = vpop.f32.mrb[9].mxu0 }
 0x447   : > { %v1822_v9 = vpop.f32.mrb[10].mxu0 }
 0x448   : > { %v1824_v10 = vpop.f32.mrb[11].mxu0 }
 0x482   : > { %v2255_v12 = vpop.f32.mrb[16].mxu1 }
 0x483   : > { %v4358_v15 = vadd.f32 %v2255_v12, %v1816_v6  ;;  %v2257_v18 = vpop.f32.mrb[17].mxu1  ;;  %v2547_v12 = vld [vmem:[%s6160_s12 + $0x18] sm:$0xff] }
 0x484   : > { %v4359_v19 = vadd.f32 %v2257_v18, %v1818_v8  ;;  %v2549_v18 = vld [vmem:[%s6160_s12 + $0x28] sm:$0xff] }
 0x485   : > { %v2282_v22 = vadd.f32 %v4358_v15, %v2275_v17  ;;  %v4221_v15 = vpack.c.bf16 %v2547_v12, %v2546_v11 }
 0x486   : > { %v2261_v21 = vpop.f32.mrb[18].mxu1  ;;  %v2283_v25 = vadd.f32 %v4359_v19, %v2279_v20 }
 0x487   : > { %v4360_v23 = vadd.f32 %v2261_v21, %v1822_v9  ;;  %v2263_v24 = vpop.f32.mrb[19].mxu1  ;;  %v2286_v29 = vmax.f32 %v2282_v22, 0.0  ;;  %v2551_v21 = vld [vmem:[%s6160_s12 + $0x38] sm:$0xff] }
 0x488   : > { %v4361_v26 = vadd.f32 %v2263_v24, %v1824_v10  ;;  %v2287_v31 = vmax.f32 %v2283_v25, 0.0  ;;  %v4218_v10 = vpack.c.bf16 %v2545_v4, %v2544_v3  ;;  %v2553_v24 = vld [vmem:[%s6160_s12 + $0x48] sm:$0xff]  ;;  %v3077_v4 = vld [vmem:[%s6163_s15 + $0x40] sm:$0xff] }
 0x489   : > { %v2284_v27 = vadd.f32 %v4360_v23, %v2275_v17  ;;  %v2548_v17 = vld [vmem:[%s6160_s12 + $0x20] sm:$0xff] }
 0x48a   : > { %v2285_v28 = vadd.f32 %v4361_v26, %v2279_v20  ;;  %v4224_v19 = vpack.c.bf16 %v2549_v18, %v2548_v17  ;;  %v2550_v20 = vld [vmem:[%s6160_s12 + $0x30] sm:$0xff]  ;;  %v2552_v23 = vld [vmem:[%s6160_s12 + $0x40] sm:$0xff]  ;;  %v3569_v18 = vld [vmem:[%s6161_s13 + $0x58] sm:$0xff] }
 0x48b   : > { %v2288_v30 = vmax.f32 %v2284_v27, 0.0  ;;  %v4227_v22 = vpack.c.bf16 %v2551_v21, %v2550_v20  ;;  %v4230_v25 = vpack.c.bf16 %v2553_v24, %v2552_v23  ;;  %v2554_v26 = vld [vmem:[%s6160_s12 + $0x50] sm:$0xff]  ;;  %v2555_v27 = vld [vmem:[%s6160_s12 + $0x58] sm:$0xff]  ;;  %v3570_v20 = vld [vmem:[%s6161_s13 + $0x60] sm:$0xff] }
 0x48c   : > { %v2289_v32 = vmax.f32 %v2285_v28, 0.0  ;;  %v4233_v28 = vpack.c.bf16 %v2555_v27, %v2554_v26  ;;  %v3568_v17 = vld [vmem:[%s6161_s13 + $0x50] sm:$0xff]  ;;  %v3571_v21 = vld [vmem:[%s6161_s13 + $0x68] sm:$0xff]  ;;  %v3574_v27 = vld [vmem:[%s6161_s13 + $0x80] sm:$0xff] }
 0x48d   : > { %v4178_v33 = vpack.c.bf16 %v2288_v30, %v2286_v29  ;;  %v2556_v29 = vld [vmem:[%s6160_s12 + $0x60] sm:$0xff]  ;;  %v2557_v30 = vld [vmem:[%s6160_s12 + $0x68] sm:$0xff]  ;;  %v4266_v23 = vpack.c.bf16 %v3571_v21, %v3570_v20  ;;  %v3572_v24 = vld [vmem:[%s6161_s13 + $0x70] sm:$0xff] }
 0x48e   : > { %v4175_v14 = vpack.c.bf16 %v2289_v32, %v2287_v31  ;;  %v4236_v31 = vpack.c.bf16 %v2557_v30, %v2556_v29  ;;  %v2558_v32 = vld [vmem:[%s6160_s12 + $0x70] sm:$0xff]  ;;  %v3081_v20 = vld [vmem:[%s6163_s15 + $0x60] sm:$0xff]  ;;  %v3082_v21 = vld [vmem:[%s6163_s15 + $0x68] sm:$0xff] }
 0x48f   : > { %v3576_v30 = vld [vmem:[%s6161_s13 + $0x90] sm:$0xff] }
 0x490   : > { %4177 = vmatprep.subr.msk.bf16.mxu0 %vm4176_vm9, %v4175_v14 }
 0x491   : > { %4180 = vmatpush1.bf16.msk.msra.mxu0 %vm4176_vm9, %v4178_v33 }
 0x492   : > { %4183 = vmatprep.subr.msk.bf16.mxu0 %vm4176_vm9, %v4175_v14 }
 0x494   : > { %3561 = vmatmul.mubr.msk.f32.vlgmr.msra.gmra.mrb[12].mxu0 %vm2291_vm10, %v2290_v13  ;;  %v2560_v13 = vld [vmem:[%s6160_s12 + $0x80] sm:$0xff] }
 0x495   : > { %4186 = vmatpush1.bf16.msk.msra.mxu0 %vm4176_vm9, %v4178_v33  ;;  %2441 = vmatprep.mubr.f32.mxu0 %v4522_v7  ;;  %v2559_v33 = vld [vmem:[%s6160_s12 + $0x78] sm:$0xff]  ;;  %v4242_v34 = vpack.c.bf16 %v2561_v16, %v2560_v13  ;;  %v3581_v16 = vld [vmem:[%s6161_s13 + $0xb0] sm:$0xff] }
 0x496   : > { %4187 = vmatprep.subr.bf16.mxu0 %v4524_v53  ;;  %v4239_v14 = vpack.c.bf16 %v2559_v33, %v2558_v32  ;;  %v3579_v33 = vld [vmem:[%s6161_s13 + $0xa0] sm:$0xff] }
 0x498   : > { %3564 = vmatmul.mubr.msk.f32.vlgmr.msra.gmra.mrb[14].mxu0 %vm2291_vm10, %v2373_v35  ;;  %v2562_v35 = vld [vmem:[%s6160_s12 + $0x90] sm:$0xff] }
 0x499   : > { %4189 = vmatpush1.bf16.msra.mxu0 %v4188_v36  ;;  %v2563_v36 = vld [vmem:[%s6160_s12 + $0x98] sm:$0xff] }
 0x49a   : > { %4190 = vmatprep.subr.bf16.mxu0 %v4524_v53  ;;  %v4245_v37 = vpack.c.bf16 %v2563_v36, %v2562_v35 }
 0x49d   : > { %4192 = vmatpush1.bf16.msra.mxu0 %v4191_v39  ;;  %v2640_v39 = vld [vmem:[%s6161_s13 + $0x8] sm:$0xff] }
 0x49e   : > { %4193 = vmatprep.subr.bf16.mxu0 %v4524_v53  ;;  %v4248_v41 = vpack.c.bf16 %v2640_v39, %v2639_v38  ;;  %v3584_v38 = vld [vmem:[%s6161_s13 + $0xc8] sm:$0xff] }
 0x4a0   : > { %4249 = vmatpush3.bf16.msra.mxu1 %v4248_v41  ;;  %v3586_v41 = vld [vmem:[%s6161_s13 + $0xd8] sm:$0xff] }
 0x4a1   : > { %4195 = vmatpush1.bf16.msra.mxu0 %v4194_v42  ;;  %v2642_v42 = vld [vmem:[%s6161_s13 + $0x18] sm:$0xff]  ;;  %4250 = vmatprep.subr.bf16.mxu1 %v4524_v53 }
 0x4a2   : > { %4196 = vmatprep.subr.bf16.mxu0 %v4524_v53  ;;  %v4251_v43 = vpack.c.bf16 %v2642_v42, %v2641_v40  ;;  %v3585_v40 = vld [vmem:[%s6161_s13 + $0xd0] sm:$0xff] }
 0x4a3   : > { %v4287_v42 = vpack.c.bf16 %v3586_v41, %v3585_v40  ;;  %v3170_v41 = vld [vmem:[%s6165_s17 + $0x50] sm:$0xf] }
 0x4a4   : > { %4252 = vmatpush3.bf16.msra.mxu1 %v4251_v43  ;;  %v3587_v43 = vld [vmem:[%s6161_s13 + $0xe0] sm:$0xff] }
 0x4a5   : > { %4198 = vmatpush1.bf16.msra.mxu0 %v4197_v45  ;;  %v2644_v45 = vld [vmem:[%s6161_s13 + $0x28] sm:$0xff]  ;;  %4253 = vmatprep.subr.bf16.mxu1 %v4524_v53 }
 0x4a6   : > { %4199 = vmatprep.subr.bf16.mxu0 %v4524_v53  ;;  %v4254_v46 = vpack.c.bf16 %v2644_v45, %v2643_v44  ;;  %v3588_v44 = vld [vmem:[%s6161_s13 + $0xe8] sm:$0xff] }
 0x4a7   : > { %v4290_v45 = vpack.c.bf16 %v3588_v44, %v3587_v43 }
 0x4a8   : > { %4255 = vmatpush3.bf16.msra.mxu1 %v4254_v46  ;;  %v3590_v46 = vld [vmem:[%s6161_s13 + $0xf0] sm:$0xff] }
 0x4a9   : > { %4201 = vmatpush1.bf16.msra.mxu0 %v4200_v48  ;;  %4256 = vmatprep.subr.bf16.mxu1 %v4524_v53  ;;  %v2646_v48 = vld [vmem:[%s6161_s13 + $0x38] sm:$0xff] }
 0x4aa   : > { %4202 = vmatprep.subr.bf16.mxu0 %v4524_v53  ;;  %v4257_v49 = vpack.c.bf16 %v2646_v48, %v2645_v47  ;;  %v3591_v47 = vld [vmem:[%s6161_s13 + $0xf8] sm:$0xff] }
 0x4ab   : > { %v4293_v48 = vpack.c.bf16 %v3591_v47, %v3590_v46 }
 0x4ac   : > { %4258 = vmatpush3.bf16.msra.mxu1 %v4257_v49  ;;  %v3592_v49 = vld [vmem:[%s6161_s13 + $0x100] sm:$0xff] }
 0x4ad   : > { %4204 = vmatpush1.bf16.msra.mxu0 %v4203_v51  ;;  %v2648_v51 = vld [vmem:[%s6161_s13 + $0x48] sm:$0xff]  ;;  %4259 = vmatprep.subr.bf16.mxu1 %v4524_v53 }
 0x4ae   : > { %4205 = vmatprep.subr.bf16.mxu0 %v4524_v53  ;;  %v4260_v52 = vpack.c.bf16 %v2648_v51, %v2647_v50  ;;  %v3593_v50 = vld [vmem:[%s6161_s13 + $0x108] sm:$0xff] }
 0x4b0   : > { %4261 = vmatpush3.bf16.msra.mxu1 %v4260_v52  ;;  %v4296_v52 = vpack.c.bf16 %v3593_v50, %v3592_v49 }
 0x4b1   : > { %4207 = vmatpush1.bf16.msra.mxu0 %v4206_v55  ;;  %4262 = vmatprep.subr.bf16.mxu1 %v4524_v53 }
 0x4b2   : > { %4208 = vmatprep.subr.bf16.mxu0 %v4524_v53 }
 0x4b5   : > { %4210 = vmatpush1.bf16.msra.mxu0 %v4209_v58  ;;  %v3071_v58 = vld [vmem:[%s6163_s15 + $0x10] sm:$0xff] }
 0x4b6   : > { %4211 = vmatprep.subr.bf16.mxu0 %v4524_v53 }
 0x4b9   : > { %4213 = vmatpush1.bf16.msra.mxu0 %v4212_v61  ;;  %v4326_v61 = vpack.c.bf16 %v3072_v60, %v3071_v58  ;;  %v3597_v58 = vld [vmem:[%s6161_s13 + $0x128] sm:$0xff]  ;;  %v3598_v60 = vld [vmem:[%s6161_s13 + $0x130] sm:$0xff] }
 0x4ba   : > { %4214 = vmatprep.subr.bf16.mxu0 %v4524_v53 }
 0x4bd   : > { %4216 = vmatpush1.bf16.msra.mxu0 %v4215_v0  ;;  %v4329_v0 = vpack.c.bf16 %v3074_v63, %v3073_v62  ;;  %v3601_v63 = vld [vmem:[%s6161_s13 + $0x140] sm:$0xff] }
 0x4be   : > { %4217 = vmatprep.subr.bf16.mxu0 %v4524_v53 }
 0x567   : > { %v2368_v1 = vpop.f32.mrb[12].mxu0 }
 0x568   : > { %v2370_v2 = vpop.f32.mrb[13].mxu0 }
 0x56b   : > { %v2443_v5 = vpop.f32.mrb[14].mxu0 }
 0x56c   : > { %v2448_v6 = vmax.f32 %v2368_v1, %v2443_v5  ;;  %v2445_v8 = vpop.f32.mrb[15].mxu0  ;;  %v3075_v1 = vld [vmem:[%s6163_s15 + $0x30] sm:$0xff]  ;;  %v3078_v5 = vld [vmem:[%s6163_s15 + $0x48] sm:$0xff] }
 0x56d   : > { %v2449_v9 = vmax.f32 %v2370_v2, %v2445_v8  ;;  %v3076_v2 = vld [vmem:[%s6163_s15 + $0x38] sm:$0xff]  ;;  %v3079_v8 = vld [vmem:[%s6163_s15 + $0x50] sm:$0xff] }
 0x56e   : > { %v4332_v3 = vpack.c.bf16 %v3076_v2, %v3075_v1  ;;  %v3603_v2 = vld [vmem:[%s6161_s13 + $0x150] sm:$0xff] }
 0x56f   : > { %3565 = vmatprep.mubr.msk.f32.mxu0 %vm2470_vm11, %v2449_v9 }
 0x570   : > { %2539 = vmatmul.mubr.f32.vlgmr.msra.gmra.mrb[16].mxu0 %v2448_v6 }
 0x571   : > { %4219 = vmatpush1.bf16.msra.mxu0 %v4218_v10  ;;  %3566 = vmatprep.mubr.msk.f32.mxu0 %vm2470_vm11, %v2449_v9  ;;  %v3080_v9 = vld [vmem:[%s6163_s15 + $0x58] sm:$0xff] }
 0x572   : > { %4220 = vmatprep.subr.bf16.mxu0 %v4524_v53  ;;  %v4338_v10 = vpack.c.bf16 %v3080_v9, %v3079_v8  ;;  %v3606_v8 = vld [vmem:[%s6161_s13 + $0x168] sm:$0xff] }
 0x575   : > { %4222 = vmatpush1.bf16.msra.mxu0 %v4221_v15 }
 0x576   : > { %4223 = vmatprep.subr.bf16.mxu0 %v4524_v53 }
 0x579   : > { %4225 = vmatpush1.bf16.msra.mxu0 %v4224_v19  ;;  %v4263_v19 = vpack.c.bf16 %v3569_v18, %v3568_v17  ;;  %v3610_v17 = vld [vmem:[%s6161_s13 + $0x188] sm:$0xff] }
 0x57a   : > { %4226 = vmatprep.subr.bf16.mxu0 %v4524_v53 }
 0x57d   : > { %4228 = vmatpush1.bf16.msra.mxu0 %v4227_v22 }
 0x57e   : > { %4229 = vmatprep.subr.bf16.mxu0 %v4524_v53 }
 0x581   : > { %4231 = vmatpush1.bf16.msra.mxu0 %v4230_v25  ;;  %v3573_v25 = vld [vmem:[%s6161_s13 + $0x78] sm:$0xff] }
 0x582   : > { %4232 = vmatprep.subr.bf16.mxu0 %v4524_v53  ;;  %v4269_v26 = vpack.c.bf16 %v3573_v25, %v3572_v24  ;;  %v2637_v24 = vld [vmem:[%s6162_s14] sm:$0x1] }
 0x583   : > { %v3160_v25 = vld [vmem:[%s6165_s17] sm:$0xff] }
 0x585   : > { %4234 = vmatpush1.bf16.msra.mxu0 %v4233_v28  ;;  %v3575_v28 = vld [vmem:[%s6161_s13 + $0x88] sm:$0xff] }
 0x586   : > { %4235 = vmatprep.subr.bf16.mxu0 %v4524_v53  ;;  %v4272_v29 = vpack.c.bf16 %v3575_v28, %v3574_v27 }
 0x589   : > { %4237 = vmatpush1.bf16.msra.mxu0 %v4236_v31  ;;  %v3577_v31 = vld [vmem:[%s6161_s13 + $0x98] sm:$0xff] }
 0x58a   : > { %4238 = vmatprep.subr.bf16.mxu0 %v4524_v53  ;;  %v4275_v32 = vpack.c.bf16 %v3577_v31, %v3576_v30 }
 0x58d   : > { %4240 = vmatpush1.bf16.msra.mxu0 %v4239_v14  ;;  %v3580_v14 = vld [vmem:[%s6161_s13 + $0xa8] sm:$0xff] }
 0x58e   : > { %4241 = vmatprep.subr.bf16.mxu0 %v4524_v53  ;;  %v4278_v13 = vpack.c.bf16 %v3580_v14, %v3579_v33  ;;  %v3163_v33 = vld [vmem:[%s6165_s17 + $0x18] sm:$0xff] }
 0x591   : > { %4243 = vmatpush1.bf16.msra.mxu0 %v4242_v34  ;;  %v3582_v34 = vld [vmem:[%s6161_s13 + $0xb8] sm:$0xff] }
 0x592   : > { %4244 = vmatprep.subr.bf16.mxu0 %v4524_v53  ;;  %v4281_v36 = vpack.c.bf16 %v3582_v34, %v3581_v16  ;;  %v3165_v16 = vld [vmem:[%s6165_s17 + $0x28] sm:$0xff] }
 0x595   : > { %4246 = vmatpush1.bf16.msra.mxu0 %v4245_v37  ;;  %v3583_v37 = vld [vmem:[%s6161_s13 + $0xc0] sm:$0xff] }
 0x596   : > { %4322 = vmatprep.subr.bf16.mxu0 %v4524_v53  ;;  %v4284_v39 = vpack.c.bf16 %v3584_v38, %v3583_v37  ;;  %v3168_v38 = vld [vmem:[%s6165_s17 + $0x40] sm:$0xff] }
 0x598   : > { %2629 = vmatmul.mubr.f32.vlgmr.msra.gmra.mrb[18].mxu0 %v2448_v6  ;;  %v4335_v6 = vpack.c.bf16 %v3078_v5, %v3077_v4 }
 0x599   : > { %3847 = vmatprep.mubr.msk.f32.mxu0 %vm4525_vm12, %v4522_v7  ;;  %4324 = vmatpush3.bf16.msra.mxu0 %v4323_v59  ;;  %v4302_v59 = vpack.c.bf16 %v3597_v58, %v3596_v57 }
 0x59a   : > { %4325 = vmatprep.subr.bf16.mxu0 %v4524_v53 }
 0x59d   : > { %4327 = vmatpush3.bf16.msra.mxu0 %v4326_v61  ;;  %v3599_v61 = vld [vmem:[%s6161_s13 + $0x138] sm:$0xff] }
 0x59e   : > { %4328 = vmatprep.subr.bf16.mxu0 %v4524_v53  ;;  %v4305_v62 = vpack.c.bf16 %v3599_v61, %v3598_v60 }
 0x5a1   : > { %4330 = vmatpush3.bf16.msra.mxu0 %v4329_v0  ;;  %v3602_v0 = vld [vmem:[%s6161_s13 + $0x148] sm:$0xff] }
 0x5a2   : > { %4331 = vmatprep.subr.bf16.mxu0 %v4524_v53  ;;  %v4308_v1 = vpack.c.bf16 %v3602_v0, %v3601_v63 }
 0x5a5   : > { %4333 = vmatpush3.bf16.msra.mxu0 %v4332_v3  ;;  %v3604_v3 = vld [vmem:[%s6161_s13 + $0x158] sm:$0xff] }
 0x5a6   : > { %4334 = vmatprep.subr.bf16.mxu0 %v4524_v53  ;;  %v4311_v5 = vpack.c.bf16 %v3604_v3, %v3603_v2 }
 0x5a9   : > { %4336 = vmatpush3.bf16.msra.mxu0 %v4335_v6  ;;  %v3605_v6 = vld [vmem:[%s6161_s13 + $0x160] sm:$0xff] }
 0x5aa   : > { %4337 = vmatprep.subr.bf16.mxu0 %v4524_v53  ;;  %v4314_v9 = vpack.c.bf16 %v3606_v8, %v3605_v6 }
 0x5ad   : > { %4339 = vmatpush3.bf16.msra.mxu0 %v4338_v10  ;;  %v3607_v10 = vld [vmem:[%s6161_s13 + $0x170] sm:$0xff] }
 0x5ae   : > { %4340 = vmatprep.subr.bf16.mxu0 %v4524_v53 }
 0x643   : > { %v2540_v54 = vpop.f32.mrb[16].mxu0 }
 0x644   : > { %v2542_v55 = vpop.f32.mrb[17].mxu0 }
 0x645   : > { %v3595_v55 = vld [vmem:[%s6161_s13 + $0x118] sm:$0xff] }
 0x66b   : > { %v2630_v11 = vpop.f32.mrb[18].mxu0 }
 0x66c   : > { %v2634_v12 = vmax.f32 %v2540_v54, %v2630_v11  ;;  %v2632_v15 = vpop.f32.mrb[19].mxu0  ;;  %v3594_v54 = vld [vmem:[%s6161_s13 + $0x110] sm:$0xff]  ;;  %v3608_v11 = vld [vmem:[%s6161_s13 + $0x178] sm:$0xff] }
 0x66d   : > { %v4299_v56 = vpack.c.bf16 %v3595_v55, %v3594_v54  ;;  %v3609_v15 = vld [vmem:[%s6161_s13 + $0x180] sm:$0xff] }
 0x66e   : > { %2636 = vst.msk [vmem:[#allocation3] sm:$0x1f] %vm2635_vm13, %v2634_v12  ;;  %v4317_v12 = vpack.c.bf16 %v3608_v11, %v3607_v10  ;;  %v4320_v18 = vpack.c.bf16 %v3610_v17, %v3609_v15 }
 0x675   : > { %v2638_v22 = vld [vmem:[#allocation3] sm:$0x1]  ;;  %v2724_v35 = vld [vmem:[#allocation3 + $0x1] sm:$0x1]  ;;  %v2810_v51 = vld [vmem:[#allocation3 + $0x2] sm:$0x1] }
 0x676   : > { %3723 = vmatmul.mubr.msk.f32.vlgmr.msra.gmra.mrb[20].mxu1 %vm2649_vm14, %v2638_v22  ;;  %v2896_v4 = vld [vmem:[#allocation3 + $0x3] sm:$0x1]  ;;  %v4341_v22 = vpack.c.bf16 %v3082_v21, %v3081_v20 }
 0x677   : > { %4264 = vmatpush3.bf16.msra.mxu1 %v4263_v19  ;;  %3745 = vmatprep.mubr.msk.f32.mxu1 %vm4525_vm12, %v4522_v7  ;;  %v2982_v19 = vld [vmem:[#allocation3 + $0x4] sm:$0x1] }
 0x678   : > { %4265 = vmatprep.subr.bf16.mxu1 %v4524_v53  ;;  %4342 = vmatpush3.bf16.msra.mxu0 %v4341_v22 }
 0x679   : > { %3845 = vmatprep.subr.mxu0 %v4522_v7 }
 0x67b   : > { %4267 = vmatpush3.bf16.msra.mxu1 %v4266_v23  ;;  %v3083_v23 = vld [vmem:[%s6163_s15 + $0x70] sm:$0xff] }
 0x67c   : > { %4268 = vmatprep.subr.bf16.mxu1 %v4524_v53  ;;  %3846 = vmatpush3.msra.mxu0 %v3083_v23 }
 0x67d   : > { %4343 = vmatprep.subr.bf16.mxu0 %v4524_v53 }
 0x67f   : > { %4270 = vmatpush3.bf16.msra.mxu1 %v4269_v26  ;;  %v3161_v26 = vld [vmem:[%s6165_s17 + $0x8] sm:$0xff] }
 0x680   : > { %4271 = vmatprep.subr.bf16.mxu1 %v4524_v53  ;;  %v4344_v30 = vpack.c.bf16 %v3161_v26, %v3160_v25 }
 0x683   : > { %4273 = vmatpush3.bf16.msra.mxu1 %v4272_v29 }
 0x684   : > { %4274 = vmatprep.subr.bf16.mxu1 %v4524_v53 }
 0x687   : > { %4276 = vmatpush3.bf16.msra.mxu1 %v4275_v32  ;;  %v3162_v32 = vld [vmem:[%s6165_s17 + $0x10] sm:$0xff] }
 0x688   : > { %4277 = vmatprep.subr.bf16.mxu1 %v4524_v53  ;;  %v4347_v14 = vpack.c.bf16 %v3163_v33, %v3162_v32 }
 0x68a   : > { %3746 = vmatmul.mubr.msk.f32.vlgmr.msra.gmra.mrb[20].mxu1 %vm2649_vm14, %v2724_v35  ;;  %v3166_v35 = vld [vmem:[%s6165_s17 + $0x30] sm:$0xff] }
 0x68b   : > { %4279 = vmatpush3.bf16.msra.mxu1 %v4278_v13  ;;  %3768 = vmatprep.mubr.msk.f32.mxu1 %vm4525_vm12, %v4522_v7  ;;  %v3164_v13 = vld [vmem:[%s6165_s17 + $0x20] sm:$0xff] }
 0x68c   : > { %4280 = vmatprep.subr.bf16.mxu1 %v4524_v53  ;;  %v4350_v34 = vpack.c.bf16 %v3165_v16, %v3164_v13 }
 0x68f   : > { %4282 = vmatpush3.bf16.msra.mxu1 %v4281_v36  ;;  %v3167_v36 = vld [vmem:[%s6165_s17 + $0x38] sm:$0xff] }
 0x690   : > { %4283 = vmatprep.subr.bf16.mxu1 %v4524_v53  ;;  %v4353_v37 = vpack.c.bf16 %v3167_v36, %v3166_v35 }
 0x693   : > { %4285 = vmatpush3.bf16.msra.mxu1 %v4284_v39  ;;  %v3169_v39 = vld [vmem:[%s6165_s17 + $0x48] sm:$0xff] }
 0x694   : > { %4286 = vmatprep.subr.bf16.mxu1 %v4524_v53  ;;  %v4356_v40 = vpack.c.bf16 %v3169_v39, %v3168_v38 }
 0x697   : > { %4288 = vmatpush3.bf16.msra.mxu1 %v4287_v42 }
 0x698   : > { %4289 = vmatprep.subr.bf16.mxu1 %v4524_v53 }
 0x69b   : > { %4291 = vmatpush3.bf16.msra.mxu1 %v4290_v45 }
 0x69c   : > { %4292 = vmatprep.subr.bf16.mxu1 %v4524_v53 }
 0x69e   : > { %3769 = vmatmul.mubr.msk.f32.vlgmr.msra.gmra.mrb[20].mxu1 %vm2649_vm14, %v2810_v51 }
 0x69f   : > { %4294 = vmatpush3.bf16.msra.mxu1 %v4293_v48  ;;  %3791 = vmatprep.mubr.msk.f32.mxu1 %vm4525_vm12, %v4522_v7 }
 0x6a0   : > { %4295 = vmatprep.subr.bf16.mxu1 %v4524_v53 }
 0x6a3   : > { %4297 = vmatpush3.bf16.msra.mxu1 %v4296_v52 }
 0x6a4   : > { %4298 = vmatprep.subr.bf16.mxu1 %v4524_v53 }
 0x6a7   : > { %4300 = vmatpush3.bf16.msra.mxu1 %v4299_v56 }
 0x6a8   : > { %4301 = vmatprep.subr.bf16.mxu1 %v4524_v53 }
 0x6ab   : > { %4303 = vmatpush3.bf16.msra.mxu1 %v4302_v59 }
 0x6ac   : > { %4304 = vmatprep.subr.bf16.mxu1 %v4524_v53 }
 0x6af   : > { %4306 = vmatpush3.bf16.msra.mxu1 %v4305_v62 }
 0x6b0   : > { %4307 = vmatprep.subr.bf16.mxu1 %v4524_v53 }
 0x6b2   : > { %3792 = vmatmul.mubr.msk.f32.vlgmr.msra.gmra.mrb[20].mxu1 %vm2649_vm14, %v2896_v4 }
 0x6b3   : > { %4309 = vmatpush3.bf16.msra.mxu1 %v4308_v1  ;;  %3814 = vmatprep.mubr.msk.f32.mxu1 %vm4525_vm12, %v4522_v7 }
 0x6b4   : > { %4310 = vmatprep.subr.bf16.mxu1 %v4524_v53 }
 0x6b7   : > { %4312 = vmatpush3.bf16.msra.mxu1 %v4311_v5 }
 0x6b8   : > { %4313 = vmatprep.subr.bf16.mxu1 %v4524_v53 }
 0x6bb   : > { %4315 = vmatpush3.bf16.msra.mxu1 %v4314_v9 }
 0x6bc   : > { %4316 = vmatprep.subr.bf16.mxu1 %v4524_v53 }
 0x6bf   : > { %4318 = vmatpush3.bf16.msra.mxu1 %v4317_v12 }
 0x6c0   : > { %4319 = vmatprep.subr.bf16.mxu1 %v4524_v53 }
 0x6c3   : > { %4321 = vmatpush3.bf16.msra.mxu1 %v4320_v18 }
 0x6c6   : > { %3815 = vmatmul.mubr.msk.f32.vlgmr.msra.gmra.mrb[20].mxu1 %vm2649_vm14, %v2982_v19 }
 0x799   : > { %v3063_v27 = vpop.f32.mrb[20].mxu1 }
 0x79a   : > { %v4362_v28 = vadd.f32 %v3063_v27, %v2637_v24  ;;  %v3816_v29 = vpop.f32.mrb[21].mxu1 }
 0x79c   : > { %v3068_v31 = vmax.f32 %v4362_v28, 0.0 }
 0x79e   : > { %3848 = vmatmul.mubr.msk.f32.vlgmr.msra.gmra.mrb[20].mxu0 %vm3085_vm15, %v3068_v31 }
 0x79f   : > { %4345 = vmatpush3.bf16.msra.mxu0 %v4344_v30  ;;  %3872 = vmatprep.mubr.msk.f32.mxu0 %vm4525_vm12, %v4522_v7 }
 0x7a0   : > { %4346 = vmatprep.subr.bf16.mxu0 %v4524_v53 }
 0x7a3   : > { %4348 = vmatpush3.bf16.msra.mxu0 %v4347_v14 }
 0x7a4   : > { %4349 = vmatprep.subr.bf16.mxu0 %v4524_v53 }
 0x7a7   : > { %4351 = vmatpush3.bf16.msra.mxu0 %v4350_v34 }
 0x7a8   : > { %4352 = vmatprep.subr.bf16.mxu0 %v4524_v53 }
 0x7ab   : > { %4354 = vmatpush3.bf16.msra.mxu0 %v4353_v37 }
 0x7ac   : > { %4355 = vmatprep.subr.bf16.mxu0 %v4524_v53  ;;  %v3084_v53 = vld [vmem:[%s6164_s16] sm:$0x1] }
 0x7af   : > { %4357 = vmatpush3.bf16.msra.mxu0 %v4356_v40 }
 0x7b0   : > { %3870 = vmatprep.subr.mxu0 %v4522_v7  ;;  %v3171_v7 = vld [vmem:[%s6196_s21] sm:$0x1]  ;;  %s4464_s21 = scalar_lea.vmem %s4463_s26, 32 }
 0x7b1   : > { %p4466_p1 = scmp.lt.s32.totalorder %s4464_s21, %s4458_s0 }
 0x7b3   : > { %3871 = vmatpush3.msk.msra.mxu0 %vm1311_vm1, %v3170_v41  ;;  %p4467_p2 = por %p4466_p1, %p4465_p0 }
 0x7b5   : > { %p4468_p3 = pnand %p4467_p2, %p4461_p13 }
 0x871   : > { %v3155_v42 = vpop.f32.mrb[20].mxu0 }
 0x872   : > { %v3156_v43 = vadd.f32 %v3155_v42, %v3084_v53  ;;  %v3849_v44 = vpop.f32.mrb[21].mxu0 }
 0x874   : > { %v3159_v45 = vmax.f32 %v3156_v43, 0.0 }
 0x876   : > { %3873 = vmatmul.mubr.msk.f32.vlgmr.msra.gmra.mrb[22].mxu0 %vm1685_vm6, %v3159_v45 }
 0x949   : > { %v3244_v46 = vpop.f32.mrb[22].mxu0 }
 0x94a   : > { %v3245_v47 = vadd.f32 %v3244_v46, %v3171_v7  ;;  %v3874_v48 = vpop.f32.mrb[23].mxu0 }
 0x94c   : > { %3248 = vst [vmem:[%s594_s24] sm:$0x1] %v3245_v47 }
 0x94d   : > { %4471 = shalt.err (!%p4468_p3)
}
 0x94e   : > { %s4472_s18 = scalar_lea.hbm %s6106_s28, 16  ;;  %s4476_s23 = scalar_lea.hbm %s6197_s19, 32 }
 0x94f   : > { %p4473_p4 = scmp.ne.s32.totalorder %s6106_s28, %s4472_s18  ;;  %p4477_p9 = scmp.lt.u32.totalorder %s6106_s28, %s6197_s19 }
 0x950   : > { %p4478_p10 = scmp.lt.u32.totalorder %s4476_s23, %s4472_s18  ;;  %p4480_p12 = scmp.lt.u32.totalorder %s4472_s18, %s6106_s28 }
 0x951   : > { %p4474_p7 = pnand %p4473_p4, %p4665_p5 }
 0x952   : > { %p4479_p11 = por %p4478_p10, %p4477_p9 }
 0x953   : > { %p4475_p8 = pneg %p4474_p7 }
 0x954   : > { %p4481_p13 = por %p4480_p12, %p4479_p11 }
 0x956   : > { %p4482_p0 = pnand %p4481_p13, %p4475_p8 }
 0x958   : > { %4485 = shalt.err (!%p4482_p0)
}
 0x959   : > { %4415 = dma.vmem_to_hbm [thread:$0]  (%p4665_p5), %s6108_s22, 16, %s6106_s28, %s3250_s20  }
 0x95a PF: > { %s6198_s0 = sld [smem:[#allocation9_spill]]  ;;  %s6199_s26 = sld [smem:[#allocation7_spill]] }
 0x960   : > { %p4421_p1 = scmp.ge.s32.totalorder %s6198_s0, 2  ;;  %s3274_s27 = sand.u32 1, %s6199_s26  }
 0x961   : > { %s3275_s24 = scalar_lea.sflag [#allocation5], %s3274_s27 }
 0x962   : > { %p4418_p2 = pnand %p4421_p1, %p4669_p6 }
 0x964   : > { %4503 = dma.done.wait (!%p4418_p2), %s3275_s24, 16  }
 0x965   : > { %4505 = vsyncadd (!%p4418_p2), %s3275_s24, 4294967280  ;;  %s6201_s21 = sld [smem:[#allocation10_spill]]  ;;  %s6202_s18 = sld [smem:[#allocation8_spill]] }
 0x966   : > { %s6203_s20 = sld [smem:[#allocation11_spill]]  ;;  %s6204_s0 = smov %s4512_s30 }
 0x96b   : > { %p29_p3 = scmp.ge.s32.totalorder %s6201_s21, 4   ;;  %s6205_s30 = smov %s6202_s18 }
 0x96d   :  { %31 = sbr.rel (!%p29_p3) target bundleno = 10 (0xa), region = 143 }
 0x974   :  { %3279 = vsyncpa [#allocation5], 1 }
 0x975   :  { %3281 = vsyncpa [#allocation5 + $0x1], 1 }

</bundles_post_ra>
